<compile_context>
chip_gen: v7x
topology: tpu7x:2x2x1
jax: 0.10.0
libtpu: 0.0.40
codegen_flags: <defaults>
</compile_context>

<pallas_src>
import jax
import jax.numpy as jnp
from jax.experimental import pallas as pl
from jax.experimental.pallas import tpu as pltpu


# ----------------------------- in-kernel helpers ---------------------------------------
def _conv_relu_pool(x_flat, w_ref, b_ref, *, B, L):
    """Conv1d (valid) + ReLU + MaxPool1d(2) on time-major flat rows.

    x_flat: (L*B, Cin) with row index t*B + b.  w_ref: (K, Cin, Cout).
    Returns ((Lpool*B, Cout), Lpool).
    """
    K, _, Cout = w_ref.shape
    Lconv = L - K + 1
    Lpool = Lconv // 2
    # Sum of K shifted tap matmuls (lane-aligned operands, f32 MXU accumulation).
    # Tap k covers times [k, k+Lconv): contiguous, sublane-aligned row block (B = 8·m).
    y = jnp.dot(x_flat[0:Lconv * B, :], w_ref[0], preferred_element_type=jnp.float32)
    for k in range(1, K):
        y = y + jnp.dot(x_flat[k * B:(k + Lconv) * B, :], w_ref[k],
                        preferred_element_type=jnp.float32)
    y = jnp.maximum(y + b_ref[...], 0.0)                               # bias + ReLU
    # MaxPool1d(2): pair consecutive time steps (rows grouped [2p | 2p+1] x batch).
    y3 = y[: 2 * Lpool * B, :].reshape(Lpool, 2 * B, Cout)
    pooled = jnp.maximum(y3[:, :B, :], y3[:, B:, :])                   # (Lpool, B, Cout)
    return pooled.reshape(Lpool * B, Cout), Lpool


def _lstm_unrolled(x_flat, wih_ref, whh_ref, b_ref, *, B, T, collect_sequence):
    """Full-sequence LSTM (batch_first, h0=c0=0), fused gate order [i, f, o, g].

    x_flat: (T*B, Cin) with row index t*B + b.  wih_ref: (Cin, 4H), whh_ref: (H, 4H).
    Returns (sequence (T*B, H) or None, last hidden state (B, H)).
    """
    H = whh_ref.shape[0]
    # Hoisted fused input projection (+ combined b_ih + b_hh): ONE fat matmul, ONE buffer.
    xp = jnp.dot(x_flat, wih_ref[...], preferred_element_type=jnp.float32) + b_ref[...]
    h = jnp.zeros((B, H), jnp.float32)
    c = jnp.zeros((B, H), jnp.float32)
    hs = []
    for t in range(T):  # static unroll; only the single h @ W_hh dot is serial
        pre = xp[t * B:(t + 1) * B, :] + jnp.dot(
            h, whh_ref[...], preferred_element_type=jnp.float32)       # (B, 4H)
        sig = jax.nn.sigmoid(pre[:, :3 * H])                           # [i, f, o] in one push
        g_g = jnp.tanh(pre[:, 3 * H:])                                 # g in one push
        i_g = sig[:, :H]
        f_g = sig[:, H:2 * H]
        o_g = sig[:, 2 * H:]
        c = f_g * c + i_g * g_g
        h = o_g * jnp.tanh(c)
        if collect_sequence:
            hs.append(h)
    seq = jnp.concatenate(hs, axis=0) if collect_sequence else None    # (T*B, H)
    return seq, h


# ----------------------------- fused forward kernel ------------------------------------
def _stacked_lstm_kernel(x_ref, bn_s_ref, bn_b_ref,
                         c1w_ref, c1b_ref,
                         l1_wih_ref, l1_whh_ref, l1_b_ref,
                         c2w_ref, c2b_ref,
                         l2_wih_ref, l2_whh_ref, l2_b_ref,
                         fc_w_ref, fc_b_ref,
                         out_ref):
    Lin, B, Cin = x_ref.shape     # B = padded batch tile (multiple of 8 sublanes)

    # Folded BatchNorm1d (eval): per-channel affine on time-major flat rows.
    x_flat = x_ref[...].reshape(Lin * B, Cin)
    x_flat = x_flat * bn_s_ref[...] + bn_b_ref[...]

    # Conv1d(num_vars -> 96, k=3) + ReLU + MaxPool1d(2)
    a1, T1 = _conv_relu_pool(x_flat, c1w_ref, c1b_ref, B=B, L=Lin)

    # LSTM(96 -> 64); dropout1 is identity in eval mode.
    seq1, _ = _lstm_unrolled(a1, l1_wih_ref, l1_whh_ref, l1_b_ref,
                             B=B, T=T1, collect_sequence=True)

    # Conv1d(64 -> 32, k=2) + ReLU + MaxPool1d(2)
    a2, T2 = _conv_relu_pool(seq1, c2w_ref, c2b_ref, B=B, L=T1)

    # LSTM(32 -> 16); keep only the final hidden state (dropout2 identity).
    _, h_last = _lstm_unrolled(a2, l2_wih_ref, l2_whh_ref, l2_b_ref,
                               B=B, T=T2, collect_sequence=False)

    # Linear(16 -> num_outputs, zero-padded to 128 lanes) + tanh: lane-dense full store.
    out = (jnp.dot(h_last, fc_w_ref[...], preferred_element_type=jnp.float32)
           + fc_b_ref[...])
    out_ref[...] = jnp.tanh(out).astype(out_ref.dtype)


# ----------------------------- host-side wrapper ---------------------------------------
_B_TILE = 8          # sublane granularity: batch tile per grid step
_OUT_PAD = 128       # lane-dense output slab width


def stacked_lstm_forward(x, p, num_outputs):
    """x: (B, window, num_variables) — same layout the PyTorch module consumes."""
    B, Lin, Cin = x.shape
    B_pad = ((B + _B_TILE - 1) // _B_TILE) * _B_TILE
    num_tiles = B_pad // _B_TILE

    # Time-major (Lin, B_pad, Cin): channels on lanes, batch padded to full sublanes.
    x_tm = jnp.transpose(x, (1, 0, 2))
    if B_pad != B:
        x_tm = jnp.pad(x_tm, ((0, 0), (0, B_pad - B), (0, 0)))

    args = (x_tm, p["bn_scale"], p["bn_shift"],
            p["conv1_w"], p["conv1_b"],
            p["lstm1_wih"], p["lstm1_whh"], p["lstm1_b"],
            p["conv2_w"], p["conv2_b"],
            p["lstm2_wih"], p["lstm2_whh"], p["lstm2_b"],
            p["fc_w"], p["fc_b"])

    def resident_spec(a):   # weights: same (full) block for every grid step
        zeros = (0,) * a.ndim
        return pl.BlockSpec(a.shape, lambda i, _z=zeros: _z)

    in_specs = ([pl.BlockSpec((Lin, _B_TILE, Cin), lambda i: (0, i, 0))]
                + [resident_spec(a) for a in args[1:]])

    out_padded = pl.pallas_call(
        _stacked_lstm_kernel,
        out_shape=jax.ShapeDtypeStruct((B_pad, _OUT_PAD), jnp.float32),
        grid=(num_tiles,),
        in_specs=in_specs,
        out_specs=pl.BlockSpec((_B_TILE, _OUT_PAD), lambda i: (i, 0)),
        compiler_params=pltpu.CompilerParams(
            dimension_semantics=("parallel",),        # shards batch tiles across TCs (v7x)
            vmem_limit_bytes=32 * 1024 * 1024),       # fits v7x 64 MiB VMEM with headroom
    )(*args)

    return out_padded[:B, :num_outputs]


# ----------------------------- parameter construction ----------------------------------
def init_params(key, num_variables, num_outputs):
    C1, H1, C2, H2 = 96, 64, 32, 16
    K1, K2 = 3, 2
    ks = jax.random.split(key, 12)   # independent keys for every tensor

    def u(k, shape, fan_in):
        bound = 1.0 / jnp.sqrt(jnp.float32(fan_in))
        return jax.random.uniform(k, shape, jnp.float32, -bound, bound)

    # Folded BatchNorm1d (eval-mode running stats: mean=0, var=1, gamma=1, beta=0).
    eps = 1e-5
    gamma = jnp.ones((1, num_variables), jnp.float32)
    beta = jnp.zeros((1, num_variables), jnp.float32)
    r_mean = jnp.zeros((1, num_variables), jnp.float32)
    r_var = jnp.ones((1, num_variables), jnp.float32)
    bn_scale = gamma / jnp.sqrt(r_var + eps)
    bn_shift = beta - r_mean * bn_scale

    # Linear(16 -> num_outputs): zero-padded to 128 output lanes (tanh(0)=0, sliced off).
    fc_w = jnp.zeros((H2, _OUT_PAD), jnp.float32)
    fc_w = fc_w.at[:, :num_outputs].set(u(ks[10], (H2, num_outputs), H2))
    fc_b = jnp.zeros((1, _OUT_PAD), jnp.float32)
    fc_b = fc_b.at[:, :num_outputs].set(u(ks[11], (1, num_outputs), H2))

    return {
        "bn_scale": bn_scale,
        "bn_shift": bn_shift,
        # Conv1d(num_variables -> 96, k=3): PyTorch (Cout,Cin,K) -> per-tap (K,Cin,Cout)
        #   checkpoint import: torch_w.permute(2, 1, 0)
        "conv1_w": u(ks[0], (K1, num_variables, C1), num_variables * K1),
        "conv1_b": u(ks[1], (1, C1), num_variables * K1),
        # LSTM(96 -> 64): fused gates, order [i,f,o,g].  PyTorch stores (4H,Cin) in
        #   order [i,f,g,o]: permute gate slabs, transpose -> (Cin, 4H); b = b_ih + b_hh.
        "lstm1_wih": u(ks[2], (C1, 4 * H1), H1),
        "lstm1_whh": u(ks[3], (H1, 4 * H1), H1),
        "lstm1_b": u(ks[4], (1, 4 * H1), H1),
        # Conv1d(64 -> 32, k=2)
        "conv2_w": u(ks[5], (K2, H1, C2), H1 * K2),
        "conv2_b": u(ks[6], (1, C2), H1 * K2),
        # LSTM(32 -> 16)
        "lstm2_wih": u(ks[7], (C2, 4 * H2), H2),
        "lstm2_whh": u(ks[8], (H2, 4 * H2), H2),
        "lstm2_b": u(ks[9], (1, 4 * H2), H2),
        "fc_w": fc_w,
        "fc_b": fc_b,
    }


if __name__ == "__main__":
    B, window, num_vars, num_outputs = 2, 16, 4, 3
    key = jax.random.PRNGKey(0)
    kx, kp = jax.random.split(key)
    x = jax.random.normal(kx, (B, window, num_vars), jnp.float32)
    params = init_params(kp, num_vars, num_outputs)

    fwd = jax.jit(stacked_lstm_forward, static_argnames=("num_outputs",))
    out = jax.block_until_ready(fwd(x, params, num_outputs=num_outputs))
    assert out.shape == (B, num_outputs)
    assert bool(jnp.all(jnp.isfinite(out)))
    print("KERNEL_OK")
</pallas_src>

<mosaic_0001>
module attributes {stable_mosaic.version = 11 : i64} {
  func.func @_stacked_lstm_kernel(%arg0: i32, %arg1: memref<16x8x4xf32, #tpu.memory_space<vmem>>, %arg2: memref<1x4xf32, #tpu.memory_space<vmem>>, %arg3: memref<1x4xf32, #tpu.memory_space<vmem>>, %arg4: memref<3x4x96xf32, #tpu.memory_space<vmem>>, %arg5: memref<1x96xf32, #tpu.memory_space<vmem>>, %arg6: memref<96x256xf32, #tpu.memory_space<vmem>>, %arg7: memref<64x256xf32, #tpu.memory_space<vmem>>, %arg8: memref<1x256xf32, #tpu.memory_space<vmem>>, %arg9: memref<2x64x32xf32, #tpu.memory_space<vmem>>, %arg10: memref<1x32xf32, #tpu.memory_space<vmem>>, %arg11: memref<32x64xf32, #tpu.memory_space<vmem>>, %arg12: memref<16x64xf32, #tpu.memory_space<vmem>>, %arg13: memref<1x64xf32, #tpu.memory_space<vmem>>, %arg14: memref<16x128xf32, #tpu.memory_space<vmem>>, %arg15: memref<1x128xf32, #tpu.memory_space<vmem>>, %arg16: memref<8x128xf32, #tpu.memory_space<vmem>>) attributes {dimension_semantics = [#tpu.dimension_semantics<parallel>], iteration_bounds = array<i64: 1>, scalar_prefetch = 0 : i64, scratch_operands = 0 : i64, tpu.core_type = #tpu.core_type<tc>, window_params = [{transform_indices = @transform_0, window_bounds = array<i64: 16, 8, 4>}, {pipeline_mode = #tpu.pipeline_mode<synchronous>, transform_indices = @transform_1, window_bounds = array<i64: 1, 4>}, {pipeline_mode = #tpu.pipeline_mode<synchronous>, transform_indices = @transform_2, window_bounds = array<i64: 1, 4>}, {pipeline_mode = #tpu.pipeline_mode<synchronous>, transform_indices = @transform_3, window_bounds = array<i64: 3, 4, 96>}, {pipeline_mode = #tpu.pipeline_mode<synchronous>, transform_indices = @transform_4, window_bounds = array<i64: 1, 96>}, {pipeline_mode = #tpu.pipeline_mode<synchronous>, transform_indices = @transform_5, window_bounds = array<i64: 96, 256>}, {pipeline_mode = #tpu.pipeline_mode<synchronous>, transform_indices = @transform_6, window_bounds = array<i64: 64, 256>}, {pipeline_mode = #tpu.pipeline_mode<synchronous>, transform_indices = @transform_7, window_bounds = array<i64: 1, 256>}, {pipeline_mode = #tpu.pipeline_mode<synchronous>, transform_indices = @transform_8, window_bounds = array<i64: 2, 64, 32>}, {pipeline_mode = #tpu.pipeline_mode<synchronous>, transform_indices = @transform_9, window_bounds = array<i64: 1, 32>}, {pipeline_mode = #tpu.pipeline_mode<synchronous>, transform_indices = @transform_10, window_bounds = array<i64: 32, 64>}, {pipeline_mode = #tpu.pipeline_mode<synchronous>, transform_indices = @transform_11, window_bounds = array<i64: 16, 64>}, {pipeline_mode = #tpu.pipeline_mode<synchronous>, transform_indices = @transform_12, window_bounds = array<i64: 1, 64>}, {pipeline_mode = #tpu.pipeline_mode<synchronous>, transform_indices = @transform_13, window_bounds = array<i64: 16, 128>}, {pipeline_mode = #tpu.pipeline_mode<synchronous>, transform_indices = @transform_14, window_bounds = array<i64: 1, 128>}, {transform_indices = @transform_15, window_bounds = array<i64: 8, 128>}]} {
    %c0 = arith.constant 0 : index
    %c0_0 = arith.constant 0 : index
    %c0_1 = arith.constant 0 : index
    %0 = vector.load %arg1[%c0, %c0_0, %c0_1] : memref<16x8x4xf32, #tpu.memory_space<vmem>>, vector<16x8x4xf32>
    %1 = vector.shape_cast %0 : vector<16x8x4xf32> to vector<128x4xf32>
    %c0_2 = arith.constant 0 : index
    %c0_3 = arith.constant 0 : index
    %2 = vector.load %arg2[%c0_2, %c0_3] : memref<1x4xf32, #tpu.memory_space<vmem>>, vector<1x4xf32>
    %3 = vector.broadcast %2 : vector<1x4xf32> to vector<128x4xf32>
    %4 = arith.mulf %1, %3 : vector<128x4xf32>
    %c0_4 = arith.constant 0 : index
    %c0_5 = arith.constant 0 : index
    %5 = vector.load %arg3[%c0_4, %c0_5] : memref<1x4xf32, #tpu.memory_space<vmem>>, vector<1x4xf32>
    %6 = vector.broadcast %5 : vector<1x4xf32> to vector<128x4xf32>
    %7 = arith.addf %4, %6 : vector<128x4xf32>
    %8 = vector.extract_strided_slice %7 {offsets = [0, 0], sizes = [112, 4], strides = [1, 1]} : vector<128x4xf32> to vector<112x4xf32>
    %c0_6 = arith.constant 0 : index
    %c0_7 = arith.constant 0 : index
    %c0_8 = arith.constant 0 : index
    %9 = vector.load %arg4[%c0_6, %c0_7, %c0_8] : memref<3x4x96xf32, #tpu.memory_space<vmem>>, vector<1x4x96xf32>
    %10 = vector.shape_cast %9 : vector<1x4x96xf32> to vector<4x96xf32>
    %cst = arith.constant dense<0.000000e+00> : vector<112x96xf32>
    %11 = tpu.matmul %8, %10, %cst {dimension_numbers = #tpu.dot_dimension_numbers<[1], [0], [0], [1], [0, 0, 1, 1], [], []>} : vector<112x4xf32>, vector<4x96xf32>, vector<112x96xf32> -> vector<112x96xf32>
    %12 = vector.extract_strided_slice %7 {offsets = [8, 0], sizes = [112, 4], strides = [1, 1]} : vector<128x4xf32> to vector<112x4xf32>
    %c1 = arith.constant 1 : index
    %c0_9 = arith.constant 0 : index
    %c0_10 = arith.constant 0 : index
    %13 = vector.load %arg4[%c1, %c0_9, %c0_10] : memref<3x4x96xf32, #tpu.memory_space<vmem>>, vector<1x4x96xf32>
    %14 = vector.shape_cast %13 : vector<1x4x96xf32> to vector<4x96xf32>
    %cst_11 = arith.constant dense<0.000000e+00> : vector<112x96xf32>
    %15 = tpu.matmul %12, %14, %cst_11 {dimension_numbers = #tpu.dot_dimension_numbers<[1], [0], [0], [1], [0, 0, 1, 1], [], []>} : vector<112x4xf32>, vector<4x96xf32>, vector<112x96xf32> -> vector<112x96xf32>
    %16 = arith.addf %11, %15 : vector<112x96xf32>
    %17 = vector.extract_strided_slice %7 {offsets = [16, 0], sizes = [112, 4], strides = [1, 1]} : vector<128x4xf32> to vector<112x4xf32>
    %c2 = arith.constant 2 : index
    %c0_12 = arith.constant 0 : index
    %c0_13 = arith.constant 0 : index
    %18 = vector.load %arg4[%c2, %c0_12, %c0_13] : memref<3x4x96xf32, #tpu.memory_space<vmem>>, vector<1x4x96xf32>
    %19 = vector.shape_cast %18 : vector<1x4x96xf32> to vector<4x96xf32>
    %cst_14 = arith.constant dense<0.000000e+00> : vector<112x96xf32>
    %20 = tpu.matmul %17, %19, %cst_14 {dimension_numbers = #tpu.dot_dimension_numbers<[1], [0], [0], [1], [0, 0, 1, 1], [], []>} : vector<112x4xf32>, vector<4x96xf32>, vector<112x96xf32> -> vector<112x96xf32>
    %21 = arith.addf %16, %20 : vector<112x96xf32>
    %c0_15 = arith.constant 0 : index
    %c0_16 = arith.constant 0 : index
    %22 = vector.load %arg5[%c0_15, %c0_16] : memref<1x96xf32, #tpu.memory_space<vmem>>, vector<1x96xf32>
    %23 = vector.broadcast %22 : vector<1x96xf32> to vector<112x96xf32>
    %24 = arith.addf %21, %23 : vector<112x96xf32>
    %cst_17 = arith.constant 0.000000e+00 : f32
    %25 = vector.broadcast %cst_17 : f32 to vector<112x96xf32>
    %26 = arith.maximumf %24, %25 : vector<112x96xf32>
    %27 = vector.shape_cast %26 : vector<112x96xf32> to vector<7x16x96xf32>
    %28 = vector.extract_strided_slice %27 {offsets = [0, 0, 0], sizes = [7, 8, 96], strides = [1, 1, 1]} : vector<7x16x96xf32> to vector<7x8x96xf32>
    %29 = vector.extract_strided_slice %27 {offsets = [0, 8, 0], sizes = [7, 8, 96], strides = [1, 1, 1]} : vector<7x16x96xf32> to vector<7x8x96xf32>
    %30 = arith.maximumf %28, %29 : vector<7x8x96xf32>
    %31 = vector.shape_cast %30 : vector<7x8x96xf32> to vector<56x96xf32>
    %c0_18 = arith.constant 0 : index
    %c0_19 = arith.constant 0 : index
    %32 = vector.load %arg6[%c0_18, %c0_19] : memref<96x256xf32, #tpu.memory_space<vmem>>, vector<96x256xf32>
    %cst_20 = arith.constant dense<0.000000e+00> : vector<56x256xf32>
    %33 = tpu.matmul %31, %32, %cst_20 {dimension_numbers = #tpu.dot_dimension_numbers<[1], [0], [0], [1], [0, 0, 1, 1], [], []>} : vector<56x96xf32>, vector<96x256xf32>, vector<56x256xf32> -> vector<56x256xf32>
    %c0_21 = arith.constant 0 : index
    %c0_22 = arith.constant 0 : index
    %34 = vector.load %arg8[%c0_21, %c0_22] : memref<1x256xf32, #tpu.memory_space<vmem>>, vector<1x256xf32>
    %35 = vector.broadcast %34 : vector<1x256xf32> to vector<56x256xf32>
    %36 = arith.addf %33, %35 : vector<56x256xf32>
    %cst_23 = arith.constant 0.000000e+00 : f32
    %37 = vector.broadcast %cst_23 : f32 to vector<8x64xf32>
    %cst_24 = arith.constant 0.000000e+00 : f32
    %38 = vector.broadcast %cst_24 : f32 to vector<8x64xf32>
    %39 = vector.extract_strided_slice %36 {offsets = [0, 0], sizes = [8, 256], strides = [1, 1]} : vector<56x256xf32> to vector<8x256xf32>
    %c0_25 = arith.constant 0 : index
    %c0_26 = arith.constant 0 : index
    %40 = vector.load %arg7[%c0_25, %c0_26] : memref<64x256xf32, #tpu.memory_space<vmem>>, vector<64x256xf32>
    %cst_27 = arith.constant dense<0.000000e+00> : vector<8x256xf32>
    %41 = tpu.matmul %37, %40, %cst_27 {dimension_numbers = #tpu.dot_dimension_numbers<[1], [0], [0], [1], [0, 0, 1, 1], [], []>} : vector<8x64xf32>, vector<64x256xf32>, vector<8x256xf32> -> vector<8x256xf32>
    %42 = arith.addf %39, %41 : vector<8x256xf32>
    %43 = vector.extract_strided_slice %42 {offsets = [0, 0], sizes = [8, 192], strides = [1, 1]} : vector<8x256xf32> to vector<8x192xf32>
    %44 = arith.negf %43 : vector<8x192xf32>
    %45 = math.exp %44 : vector<8x192xf32>
    %cst_28 = arith.constant 1.000000e+00 : f32
    %46 = vector.broadcast %cst_28 : f32 to vector<8x192xf32>
    %47 = arith.addf %46, %45 : vector<8x192xf32>
    %48 = arith.divf %46, %47 : vector<8x192xf32>
    %49 = vector.extract_strided_slice %42 {offsets = [0, 192], sizes = [8, 64], strides = [1, 1]} : vector<8x256xf32> to vector<8x64xf32>
    %50 = math.tanh %49 : vector<8x64xf32>
    %51 = vector.extract_strided_slice %48 {offsets = [0, 0], sizes = [8, 64], strides = [1, 1]} : vector<8x192xf32> to vector<8x64xf32>
    %52 = vector.extract_strided_slice %48 {offsets = [0, 64], sizes = [8, 64], strides = [1, 1]} : vector<8x192xf32> to vector<8x64xf32>
    %53 = vector.extract_strided_slice %48 {offsets = [0, 128], sizes = [8, 64], strides = [1, 1]} : vector<8x192xf32> to vector<8x64xf32>
    %54 = arith.mulf %52, %38 : vector<8x64xf32>
    %55 = arith.mulf %51, %50 : vector<8x64xf32>
    %56 = arith.addf %54, %55 : vector<8x64xf32>
    %57 = math.tanh %56 : vector<8x64xf32>
    %58 = arith.mulf %53, %57 : vector<8x64xf32>
    %59 = vector.extract_strided_slice %36 {offsets = [8, 0], sizes = [8, 256], strides = [1, 1]} : vector<56x256xf32> to vector<8x256xf32>
    %c0_29 = arith.constant 0 : index
    %c0_30 = arith.constant 0 : index
    %60 = vector.load %arg7[%c0_29, %c0_30] : memref<64x256xf32, #tpu.memory_space<vmem>>, vector<64x256xf32>
    %cst_31 = arith.constant dense<0.000000e+00> : vector<8x256xf32>
    %61 = tpu.matmul %58, %60, %cst_31 {dimension_numbers = #tpu.dot_dimension_numbers<[1], [0], [0], [1], [0, 0, 1, 1], [], []>} : vector<8x64xf32>, vector<64x256xf32>, vector<8x256xf32> -> vector<8x256xf32>
    %62 = arith.addf %59, %61 : vector<8x256xf32>
    %63 = vector.extract_strided_slice %62 {offsets = [0, 0], sizes = [8, 192], strides = [1, 1]} : vector<8x256xf32> to vector<8x192xf32>
    %64 = arith.negf %63 : vector<8x192xf32>
    %65 = math.exp %64 : vector<8x192xf32>
    %cst_32 = arith.constant 1.000000e+00 : f32
    %66 = vector.broadcast %cst_32 : f32 to vector<8x192xf32>
    %67 = arith.addf %66, %65 : vector<8x192xf32>
    %68 = arith.divf %66, %67 : vector<8x192xf32>
    %69 = vector.extract_strided_slice %62 {offsets = [0, 192], sizes = [8, 64], strides = [1, 1]} : vector<8x256xf32> to vector<8x64xf32>
    %70 = math.tanh %69 : vector<8x64xf32>
    %71 = vector.extract_strided_slice %68 {offsets = [0, 0], sizes = [8, 64], strides = [1, 1]} : vector<8x192xf32> to vector<8x64xf32>
    %72 = vector.extract_strided_slice %68 {offsets = [0, 64], sizes = [8, 64], strides = [1, 1]} : vector<8x192xf32> to vector<8x64xf32>
    %73 = vector.extract_strided_slice %68 {offsets = [0, 128], sizes = [8, 64], strides = [1, 1]} : vector<8x192xf32> to vector<8x64xf32>
    %74 = arith.mulf %72, %56 : vector<8x64xf32>
    %75 = arith.mulf %71, %70 : vector<8x64xf32>
    %76 = arith.addf %74, %75 : vector<8x64xf32>
    %77 = math.tanh %76 : vector<8x64xf32>
    %78 = arith.mulf %73, %77 : vector<8x64xf32>
    %79 = vector.extract_strided_slice %36 {offsets = [16, 0], sizes = [8, 256], strides = [1, 1]} : vector<56x256xf32> to vector<8x256xf32>
    %c0_33 = arith.constant 0 : index
    %c0_34 = arith.constant 0 : index
    %80 = vector.load %arg7[%c0_33, %c0_34] : memref<64x256xf32, #tpu.memory_space<vmem>>, vector<64x256xf32>
    %cst_35 = arith.constant dense<0.000000e+00> : vector<8x256xf32>
    %81 = tpu.matmul %78, %80, %cst_35 {dimension_numbers = #tpu.dot_dimension_numbers<[1], [0], [0], [1], [0, 0, 1, 1], [], []>} : vector<8x64xf32>, vector<64x256xf32>, vector<8x256xf32> -> vector<8x256xf32>
    %82 = arith.addf %79, %81 : vector<8x256xf32>
    %83 = vector.extract_strided_slice %82 {offsets = [0, 0], sizes = [8, 192], strides = [1, 1]} : vector<8x256xf32> to vector<8x192xf32>
    %84 = arith.negf %83 : vector<8x192xf32>
    %85 = math.exp %84 : vector<8x192xf32>
    %cst_36 = arith.constant 1.000000e+00 : f32
    %86 = vector.broadcast %cst_36 : f32 to vector<8x192xf32>
    %87 = arith.addf %86, %85 : vector<8x192xf32>
    %88 = arith.divf %86, %87 : vector<8x192xf32>
    %89 = vector.extract_strided_slice %82 {offsets = [0, 192], sizes = [8, 64], strides = [1, 1]} : vector<8x256xf32> to vector<8x64xf32>
    %90 = math.tanh %89 : vector<8x64xf32>
    %91 = vector.extract_strided_slice %88 {offsets = [0, 0], sizes = [8, 64], strides = [1, 1]} : vector<8x192xf32> to vector<8x64xf32>
    %92 = vector.extract_strided_slice %88 {offsets = [0, 64], sizes = [8, 64], strides = [1, 1]} : vector<8x192xf32> to vector<8x64xf32>
    %93 = vector.extract_strided_slice %88 {offsets = [0, 128], sizes = [8, 64], strides = [1, 1]} : vector<8x192xf32> to vector<8x64xf32>
    %94 = arith.mulf %92, %76 : vector<8x64xf32>
    %95 = arith.mulf %91, %90 : vector<8x64xf32>
    %96 = arith.addf %94, %95 : vector<8x64xf32>
    %97 = math.tanh %96 : vector<8x64xf32>
    %98 = arith.mulf %93, %97 : vector<8x64xf32>
    %99 = vector.extract_strided_slice %36 {offsets = [24, 0], sizes = [8, 256], strides = [1, 1]} : vector<56x256xf32> to vector<8x256xf32>
    %c0_37 = arith.constant 0 : index
    %c0_38 = arith.constant 0 : index
    %100 = vector.load %arg7[%c0_37, %c0_38] : memref<64x256xf32, #tpu.memory_space<vmem>>, vector<64x256xf32>
    %cst_39 = arith.constant dense<0.000000e+00> : vector<8x256xf32>
    %101 = tpu.matmul %98, %100, %cst_39 {dimension_numbers = #tpu.dot_dimension_numbers<[1], [0], [0], [1], [0, 0, 1, 1], [], []>} : vector<8x64xf32>, vector<64x256xf32>, vector<8x256xf32> -> vector<8x256xf32>
    %102 = arith.addf %99, %101 : vector<8x256xf32>
    %103 = vector.extract_strided_slice %102 {offsets = [0, 0], sizes = [8, 192], strides = [1, 1]} : vector<8x256xf32> to vector<8x192xf32>
    %104 = arith.negf %103 : vector<8x192xf32>
    %105 = math.exp %104 : vector<8x192xf32>
    %cst_40 = arith.constant 1.000000e+00 : f32
    %106 = vector.broadcast %cst_40 : f32 to vector<8x192xf32>
    %107 = arith.addf %106, %105 : vector<8x192xf32>
    %108 = arith.divf %106, %107 : vector<8x192xf32>
    %109 = vector.extract_strided_slice %102 {offsets = [0, 192], sizes = [8, 64], strides = [1, 1]} : vector<8x256xf32> to vector<8x64xf32>
    %110 = math.tanh %109 : vector<8x64xf32>
    %111 = vector.extract_strided_slice %108 {offsets = [0, 0], sizes = [8, 64], strides = [1, 1]} : vector<8x192xf32> to vector<8x64xf32>
    %112 = vector.extract_strided_slice %108 {offsets = [0, 64], sizes = [8, 64], strides = [1, 1]} : vector<8x192xf32> to vector<8x64xf32>
    %113 = vector.extract_strided_slice %108 {offsets = [0, 128], sizes = [8, 64], strides = [1, 1]} : vector<8x192xf32> to vector<8x64xf32>
    %114 = arith.mulf %112, %96 : vector<8x64xf32>
    %115 = arith.mulf %111, %110 : vector<8x64xf32>
    %116 = arith.addf %114, %115 : vector<8x64xf32>
    %117 = math.tanh %116 : vector<8x64xf32>
    %118 = arith.mulf %113, %117 : vector<8x64xf32>
    %119 = vector.extract_strided_slice %36 {offsets = [32, 0], sizes = [8, 256], strides = [1, 1]} : vector<56x256xf32> to vector<8x256xf32>
    %c0_41 = arith.constant 0 : index
    %c0_42 = arith.constant 0 : index
    %120 = vector.load %arg7[%c0_41, %c0_42] : memref<64x256xf32, #tpu.memory_space<vmem>>, vector<64x256xf32>
    %cst_43 = arith.constant dense<0.000000e+00> : vector<8x256xf32>
    %121 = tpu.matmul %118, %120, %cst_43 {dimension_numbers = #tpu.dot_dimension_numbers<[1], [0], [0], [1], [0, 0, 1, 1], [], []>} : vector<8x64xf32>, vector<64x256xf32>, vector<8x256xf32> -> vector<8x256xf32>
    %122 = arith.addf %119, %121 : vector<8x256xf32>
    %123 = vector.extract_strided_slice %122 {offsets = [0, 0], sizes = [8, 192], strides = [1, 1]} : vector<8x256xf32> to vector<8x192xf32>
    %124 = arith.negf %123 : vector<8x192xf32>
    %125 = math.exp %124 : vector<8x192xf32>
    %cst_44 = arith.constant 1.000000e+00 : f32
    %126 = vector.broadcast %cst_44 : f32 to vector<8x192xf32>
    %127 = arith.addf %126, %125 : vector<8x192xf32>
    %128 = arith.divf %126, %127 : vector<8x192xf32>
    %129 = vector.extract_strided_slice %122 {offsets = [0, 192], sizes = [8, 64], strides = [1, 1]} : vector<8x256xf32> to vector<8x64xf32>
    %130 = math.tanh %129 : vector<8x64xf32>
    %131 = vector.extract_strided_slice %128 {offsets = [0, 0], sizes = [8, 64], strides = [1, 1]} : vector<8x192xf32> to vector<8x64xf32>
    %132 = vector.extract_strided_slice %128 {offsets = [0, 64], sizes = [8, 64], strides = [1, 1]} : vector<8x192xf32> to vector<8x64xf32>
    %133 = vector.extract_strided_slice %128 {offsets = [0, 128], sizes = [8, 64], strides = [1, 1]} : vector<8x192xf32> to vector<8x64xf32>
    %134 = arith.mulf %132, %116 : vector<8x64xf32>
    %135 = arith.mulf %131, %130 : vector<8x64xf32>
    %136 = arith.addf %134, %135 : vector<8x64xf32>
    %137 = math.tanh %136 : vector<8x64xf32>
    %138 = arith.mulf %133, %137 : vector<8x64xf32>
    %139 = vector.extract_strided_slice %36 {offsets = [40, 0], sizes = [8, 256], strides = [1, 1]} : vector<56x256xf32> to vector<8x256xf32>
    %c0_45 = arith.constant 0 : index
    %c0_46 = arith.constant 0 : index
    %140 = vector.load %arg7[%c0_45, %c0_46] : memref<64x256xf32, #tpu.memory_space<vmem>>, vector<64x256xf32>
    %cst_47 = arith.constant dense<0.000000e+00> : vector<8x256xf32>
    %141 = tpu.matmul %138, %140, %cst_47 {dimension_numbers = #tpu.dot_dimension_numbers<[1], [0], [0], [1], [0, 0, 1, 1], [], []>} : vector<8x64xf32>, vector<64x256xf32>, vector<8x256xf32> -> vector<8x256xf32>
    %142 = arith.addf %139, %141 : vector<8x256xf32>
    %143 = vector.extract_strided_slice %142 {offsets = [0, 0], sizes = [8, 192], strides = [1, 1]} : vector<8x256xf32> to vector<8x192xf32>
    %144 = arith.negf %143 : vector<8x192xf32>
    %145 = math.exp %144 : vector<8x192xf32>
    %cst_48 = arith.constant 1.000000e+00 : f32
    %146 = vector.broadcast %cst_48 : f32 to vector<8x192xf32>
    %147 = arith.addf %146, %145 : vector<8x192xf32>
    %148 = arith.divf %146, %147 : vector<8x192xf32>
    %149 = vector.extract_strided_slice %142 {offsets = [0, 192], sizes = [8, 64], strides = [1, 1]} : vector<8x256xf32> to vector<8x64xf32>
    %150 = math.tanh %149 : vector<8x64xf32>
    %151 = vector.extract_strided_slice %148 {offsets = [0, 0], sizes = [8, 64], strides = [1, 1]} : vector<8x192xf32> to vector<8x64xf32>
    %152 = vector.extract_strided_slice %148 {offsets = [0, 64], sizes = [8, 64], strides = [1, 1]} : vector<8x192xf32> to vector<8x64xf32>
    %153 = vector.extract_strided_slice %148 {offsets = [0, 128], sizes = [8, 64], strides = [1, 1]} : vector<8x192xf32> to vector<8x64xf32>
    %154 = arith.mulf %152, %136 : vector<8x64xf32>
    %155 = arith.mulf %151, %150 : vector<8x64xf32>
    %156 = arith.addf %154, %155 : vector<8x64xf32>
    %157 = math.tanh %156 : vector<8x64xf32>
    %158 = arith.mulf %153, %157 : vector<8x64xf32>
    %159 = vector.extract_strided_slice %36 {offsets = [48, 0], sizes = [8, 256], strides = [1, 1]} : vector<56x256xf32> to vector<8x256xf32>
    %c0_49 = arith.constant 0 : index
    %c0_50 = arith.constant 0 : index
    %160 = vector.load %arg7[%c0_49, %c0_50] : memref<64x256xf32, #tpu.memory_space<vmem>>, vector<64x256xf32>
    %cst_51 = arith.constant dense<0.000000e+00> : vector<8x256xf32>
    %161 = tpu.matmul %158, %160, %cst_51 {dimension_numbers = #tpu.dot_dimension_numbers<[1], [0], [0], [1], [0, 0, 1, 1], [], []>} : vector<8x64xf32>, vector<64x256xf32>, vector<8x256xf32> -> vector<8x256xf32>
    %162 = arith.addf %159, %161 : vector<8x256xf32>
    %163 = vector.extract_strided_slice %162 {offsets = [0, 0], sizes = [8, 192], strides = [1, 1]} : vector<8x256xf32> to vector<8x192xf32>
    %164 = arith.negf %163 : vector<8x192xf32>
    %165 = math.exp %164 : vector<8x192xf32>
    %cst_52 = arith.constant 1.000000e+00 : f32
    %166 = vector.broadcast %cst_52 : f32 to vector<8x192xf32>
    %167 = arith.addf %166, %165 : vector<8x192xf32>
    %168 = arith.divf %166, %167 : vector<8x192xf32>
    %169 = vector.extract_strided_slice %162 {offsets = [0, 192], sizes = [8, 64], strides = [1, 1]} : vector<8x256xf32> to vector<8x64xf32>
    %170 = math.tanh %169 : vector<8x64xf32>
    %171 = vector.extract_strided_slice %168 {offsets = [0, 0], sizes = [8, 64], strides = [1, 1]} : vector<8x192xf32> to vector<8x64xf32>
    %172 = vector.extract_strided_slice %168 {offsets = [0, 64], sizes = [8, 64], strides = [1, 1]} : vector<8x192xf32> to vector<8x64xf32>
    %173 = vector.extract_strided_slice %168 {offsets = [0, 128], sizes = [8, 64], strides = [1, 1]} : vector<8x192xf32> to vector<8x64xf32>
    %174 = arith.mulf %172, %156 : vector<8x64xf32>
    %175 = arith.mulf %171, %170 : vector<8x64xf32>
    %176 = arith.addf %174, %175 : vector<8x64xf32>
    %177 = math.tanh %176 : vector<8x64xf32>
    %178 = arith.mulf %173, %177 : vector<8x64xf32>
    %179 = tpu.concatenate %58, %78, %98, %118, %138, %158, %178 in 0 : vector<8x64xf32>, vector<8x64xf32>, vector<8x64xf32>, vector<8x64xf32>, vector<8x64xf32>, vector<8x64xf32>, vector<8x64xf32> -> vector<56x64xf32>
    %180 = vector.extract_strided_slice %179 {offsets = [0, 0], sizes = [48, 64], strides = [1, 1]} : vector<56x64xf32> to vector<48x64xf32>
    %c0_53 = arith.constant 0 : index
    %c0_54 = arith.constant 0 : index
    %c0_55 = arith.constant 0 : index
    %181 = vector.load %arg9[%c0_53, %c0_54, %c0_55] : memref<2x64x32xf32, #tpu.memory_space<vmem>>, vector<1x64x32xf32>
    %182 = vector.shape_cast %181 : vector<1x64x32xf32> to vector<64x32xf32>
    %cst_56 = arith.constant dense<0.000000e+00> : vector<48x32xf32>
    %183 = tpu.matmul %180, %182, %cst_56 {dimension_numbers = #tpu.dot_dimension_numbers<[1], [0], [0], [1], [0, 0, 1, 1], [], []>} : vector<48x64xf32>, vector<64x32xf32>, vector<48x32xf32> -> vector<48x32xf32>
    %184 = vector.extract_strided_slice %179 {offsets = [8, 0], sizes = [48, 64], strides = [1, 1]} : vector<56x64xf32> to vector<48x64xf32>
    %c1_57 = arith.constant 1 : index
    %c0_58 = arith.constant 0 : index
    %c0_59 = arith.constant 0 : index
    %185 = vector.load %arg9[%c1_57, %c0_58, %c0_59] : memref<2x64x32xf32, #tpu.memory_space<vmem>>, vector<1x64x32xf32>
    %186 = vector.shape_cast %185 : vector<1x64x32xf32> to vector<64x32xf32>
    %cst_60 = arith.constant dense<0.000000e+00> : vector<48x32xf32>
    %187 = tpu.matmul %184, %186, %cst_60 {dimension_numbers = #tpu.dot_dimension_numbers<[1], [0], [0], [1], [0, 0, 1, 1], [], []>} : vector<48x64xf32>, vector<64x32xf32>, vector<48x32xf32> -> vector<48x32xf32>
    %188 = arith.addf %183, %187 : vector<48x32xf32>
    %c0_61 = arith.constant 0 : index
    %c0_62 = arith.constant 0 : index
    %189 = vector.load %arg10[%c0_61, %c0_62] : memref<1x32xf32, #tpu.memory_space<vmem>>, vector<1x32xf32>
    %190 = vector.broadcast %189 : vector<1x32xf32> to vector<48x32xf32>
    %191 = arith.addf %188, %190 : vector<48x32xf32>
    %cst_63 = arith.constant 0.000000e+00 : f32
    %192 = vector.broadcast %cst_63 : f32 to vector<48x32xf32>
    %193 = arith.maximumf %191, %192 : vector<48x32xf32>
    %194 = vector.shape_cast %193 : vector<48x32xf32> to vector<3x16x32xf32>
    %195 = vector.extract_strided_slice %194 {offsets = [0, 0, 0], sizes = [3, 8, 32], strides = [1, 1, 1]} : vector<3x16x32xf32> to vector<3x8x32xf32>
    %196 = vector.extract_strided_slice %194 {offsets = [0, 8, 0], sizes = [3, 8, 32], strides = [1, 1, 1]} : vector<3x16x32xf32> to vector<3x8x32xf32>
    %197 = arith.maximumf %195, %196 : vector<3x8x32xf32>
    %198 = vector.shape_cast %197 : vector<3x8x32xf32> to vector<24x32xf32>
    %c0_64 = arith.constant 0 : index
    %c0_65 = arith.constant 0 : index
    %199 = vector.load %arg11[%c0_64, %c0_65] : memref<32x64xf32, #tpu.memory_space<vmem>>, vector<32x64xf32>
    %cst_66 = arith.constant dense<0.000000e+00> : vector<24x64xf32>
    %200 = tpu.matmul %198, %199, %cst_66 {dimension_numbers = #tpu.dot_dimension_numbers<[1], [0], [0], [1], [0, 0, 1, 1], [], []>} : vector<24x32xf32>, vector<32x64xf32>, vector<24x64xf32> -> vector<24x64xf32>
    %c0_67 = arith.constant 0 : index
    %c0_68 = arith.constant 0 : index
    %201 = vector.load %arg13[%c0_67, %c0_68] : memref<1x64xf32, #tpu.memory_space<vmem>>, vector<1x64xf32>
    %202 = vector.broadcast %201 : vector<1x64xf32> to vector<24x64xf32>
    %203 = arith.addf %200, %202 : vector<24x64xf32>
    %cst_69 = arith.constant 0.000000e+00 : f32
    %204 = vector.broadcast %cst_69 : f32 to vector<8x16xf32>
    %cst_70 = arith.constant 0.000000e+00 : f32
    %205 = vector.broadcast %cst_70 : f32 to vector<8x16xf32>
    %206 = vector.extract_strided_slice %203 {offsets = [0, 0], sizes = [8, 64], strides = [1, 1]} : vector<24x64xf32> to vector<8x64xf32>
    %c0_71 = arith.constant 0 : index
    %c0_72 = arith.constant 0 : index
    %207 = vector.load %arg12[%c0_71, %c0_72] : memref<16x64xf32, #tpu.memory_space<vmem>>, vector<16x64xf32>
    %cst_73 = arith.constant dense<0.000000e+00> : vector<8x64xf32>
    %208 = tpu.matmul %204, %207, %cst_73 {dimension_numbers = #tpu.dot_dimension_numbers<[1], [0], [0], [1], [0, 0, 1, 1], [], []>} : vector<8x16xf32>, vector<16x64xf32>, vector<8x64xf32> -> vector<8x64xf32>
    %209 = arith.addf %206, %208 : vector<8x64xf32>
    %210 = vector.extract_strided_slice %209 {offsets = [0, 0], sizes = [8, 48], strides = [1, 1]} : vector<8x64xf32> to vector<8x48xf32>
    %211 = arith.negf %210 : vector<8x48xf32>
    %212 = math.exp %211 : vector<8x48xf32>
    %cst_74 = arith.constant 1.000000e+00 : f32
    %213 = vector.broadcast %cst_74 : f32 to vector<8x48xf32>
    %214 = arith.addf %213, %212 : vector<8x48xf32>
    %215 = arith.divf %213, %214 : vector<8x48xf32>
    %216 = vector.extract_strided_slice %209 {offsets = [0, 48], sizes = [8, 16], strides = [1, 1]} : vector<8x64xf32> to vector<8x16xf32>
    %217 = math.tanh %216 : vector<8x16xf32>
    %218 = vector.extract_strided_slice %215 {offsets = [0, 0], sizes = [8, 16], strides = [1, 1]} : vector<8x48xf32> to vector<8x16xf32>
    %219 = vector.extract_strided_slice %215 {offsets = [0, 16], sizes = [8, 16], strides = [1, 1]} : vector<8x48xf32> to vector<8x16xf32>
    %220 = vector.extract_strided_slice %215 {offsets = [0, 32], sizes = [8, 16], strides = [1, 1]} : vector<8x48xf32> to vector<8x16xf32>
    %221 = arith.mulf %219, %205 : vector<8x16xf32>
    %222 = arith.mulf %218, %217 : vector<8x16xf32>
    %223 = arith.addf %221, %222 : vector<8x16xf32>
    %224 = math.tanh %223 : vector<8x16xf32>
    %225 = arith.mulf %220, %224 : vector<8x16xf32>
    %226 = vector.extract_strided_slice %203 {offsets = [8, 0], sizes = [8, 64], strides = [1, 1]} : vector<24x64xf32> to vector<8x64xf32>
    %c0_75 = arith.constant 0 : index
    %c0_76 = arith.constant 0 : index
    %227 = vector.load %arg12[%c0_75, %c0_76] : memref<16x64xf32, #tpu.memory_space<vmem>>, vector<16x64xf32>
    %cst_77 = arith.constant dense<0.000000e+00> : vector<8x64xf32>
    %228 = tpu.matmul %225, %227, %cst_77 {dimension_numbers = #tpu.dot_dimension_numbers<[1], [0], [0], [1], [0, 0, 1, 1], [], []>} : vector<8x16xf32>, vector<16x64xf32>, vector<8x64xf32> -> vector<8x64xf32>
    %229 = arith.addf %226, %228 : vector<8x64xf32>
    %230 = vector.extract_strided_slice %229 {offsets = [0, 0], sizes = [8, 48], strides = [1, 1]} : vector<8x64xf32> to vector<8x48xf32>
    %231 = arith.negf %230 : vector<8x48xf32>
    %232 = math.exp %231 : vector<8x48xf32>
    %cst_78 = arith.constant 1.000000e+00 : f32
    %233 = vector.broadcast %cst_78 : f32 to vector<8x48xf32>
    %234 = arith.addf %233, %232 : vector<8x48xf32>
    %235 = arith.divf %233, %234 : vector<8x48xf32>
    %236 = vector.extract_strided_slice %229 {offsets = [0, 48], sizes = [8, 16], strides = [1, 1]} : vector<8x64xf32> to vector<8x16xf32>
    %237 = math.tanh %236 : vector<8x16xf32>
    %238 = vector.extract_strided_slice %235 {offsets = [0, 0], sizes = [8, 16], strides = [1, 1]} : vector<8x48xf32> to vector<8x16xf32>
    %239 = vector.extract_strided_slice %235 {offsets = [0, 16], sizes = [8, 16], strides = [1, 1]} : vector<8x48xf32> to vector<8x16xf32>
    %240 = vector.extract_strided_slice %235 {offsets = [0, 32], sizes = [8, 16], strides = [1, 1]} : vector<8x48xf32> to vector<8x16xf32>
    %241 = arith.mulf %239, %223 : vector<8x16xf32>
    %242 = arith.mulf %238, %237 : vector<8x16xf32>
    %243 = arith.addf %241, %242 : vector<8x16xf32>
    %244 = math.tanh %243 : vector<8x16xf32>
    %245 = arith.mulf %240, %244 : vector<8x16xf32>
    %246 = vector.extract_strided_slice %203 {offsets = [16, 0], sizes = [8, 64], strides = [1, 1]} : vector<24x64xf32> to vector<8x64xf32>
    %c0_79 = arith.constant 0 : index
    %c0_80 = arith.constant 0 : index
    %247 = vector.load %arg12[%c0_79, %c0_80] : memref<16x64xf32, #tpu.memory_space<vmem>>, vector<16x64xf32>
    %cst_81 = arith.constant dense<0.000000e+00> : vector<8x64xf32>
    %248 = tpu.matmul %245, %247, %cst_81 {dimension_numbers = #tpu.dot_dimension_numbers<[1], [0], [0], [1], [0, 0, 1, 1], [], []>} : vector<8x16xf32>, vector<16x64xf32>, vector<8x64xf32> -> vector<8x64xf32>
    %249 = arith.addf %246, %248 : vector<8x64xf32>
    %250 = vector.extract_strided_slice %249 {offsets = [0, 0], sizes = [8, 48], strides = [1, 1]} : vector<8x64xf32> to vector<8x48xf32>
    %251 = arith.negf %250 : vector<8x48xf32>
    %252 = math.exp %251 : vector<8x48xf32>
    %cst_82 = arith.constant 1.000000e+00 : f32
    %253 = vector.broadcast %cst_82 : f32 to vector<8x48xf32>
    %254 = arith.addf %253, %252 : vector<8x48xf32>
    %255 = arith.divf %253, %254 : vector<8x48xf32>
    %256 = vector.extract_strided_slice %249 {offsets = [0, 48], sizes = [8, 16], strides = [1, 1]} : vector<8x64xf32> to vector<8x16xf32>
    %257 = math.tanh %256 : vector<8x16xf32>
    %258 = vector.extract_strided_slice %255 {offsets = [0, 0], sizes = [8, 16], strides = [1, 1]} : vector<8x48xf32> to vector<8x16xf32>
    %259 = vector.extract_strided_slice %255 {offsets = [0, 16], sizes = [8, 16], strides = [1, 1]} : vector<8x48xf32> to vector<8x16xf32>
    %260 = vector.extract_strided_slice %255 {offsets = [0, 32], sizes = [8, 16], strides = [1, 1]} : vector<8x48xf32> to vector<8x16xf32>
    %261 = arith.mulf %259, %243 : vector<8x16xf32>
    %262 = arith.mulf %258, %257 : vector<8x16xf32>
    %263 = arith.addf %261, %262 : vector<8x16xf32>
    %264 = math.tanh %263 : vector<8x16xf32>
    %265 = arith.mulf %260, %264 : vector<8x16xf32>
    %c0_83 = arith.constant 0 : index
    %c0_84 = arith.constant 0 : index
    %266 = vector.load %arg14[%c0_83, %c0_84] : memref<16x128xf32, #tpu.memory_space<vmem>>, vector<16x128xf32>
    %cst_85 = arith.constant dense<0.000000e+00> : vector<8x128xf32>
    %267 = tpu.matmul %265, %266, %cst_85 {dimension_numbers = #tpu.dot_dimension_numbers<[1], [0], [0], [1], [0, 0, 1, 1], [], []>} : vector<8x16xf32>, vector<16x128xf32>, vector<8x128xf32> -> vector<8x128xf32>
    %c0_86 = arith.constant 0 : index
    %c0_87 = arith.constant 0 : index
    %268 = vector.load %arg15[%c0_86, %c0_87] : memref<1x128xf32, #tpu.memory_space<vmem>>, vector<1x128xf32>
    %269 = vector.broadcast %268 : vector<1x128xf32> to vector<8x128xf32>
    %270 = arith.addf %267, %269 : vector<8x128xf32>
    %271 = math.tanh %270 : vector<8x128xf32>
    %c0_88 = arith.constant 0 : index
    %c0_89 = arith.constant 0 : index
    %272 = vector.load %arg16[%c0_88, %c0_89] : memref<8x128xf32, #tpu.memory_space<vmem>>, vector<8x128xf32>
    tpu.vector_store %arg16[%c0_88, %c0_89], %271 {strides = array<i32>} : memref<8x128xf32, #tpu.memory_space<vmem>>, vector<8x128xf32>,
    return
  }
  func.func @transform_0(%arg0: i32) -> (i32, i32, i32) {
    %c0_i32 = arith.constant 0 : i32
    %c0_i32_0 = arith.constant 0 : i32
    %c0_i32_1 = arith.constant 0 : i32
    return %c0_i32, %arg0, %c0_i32_0 : i32, i32, i32
  }
  func.func @transform_1(%arg0: i32) -> (i32, i32) {
    %c0_i32 = arith.constant 0 : i32
    %c0_i32_0 = arith.constant 0 : i32
    %c0_i32_1 = arith.constant 0 : i32
    return %c0_i32, %c0_i32_0 : i32, i32
  }
  func.func @transform_2(%arg0: i32) -> (i32, i32) {
    %c0_i32 = arith.constant 0 : i32
    %c0_i32_0 = arith.constant 0 : i32
    %c0_i32_1 = arith.constant 0 : i32
    return %c0_i32, %c0_i32_0 : i32, i32
  }
  func.func @transform_3(%arg0: i32) -> (i32, i32, i32) {
    %c0_i32 = arith.constant 0 : i32
    %c0_i32_0 = arith.constant 0 : i32
    %c0_i32_1 = arith.constant 0 : i32
    %c0_i32_2 = arith.constant 0 : i32
    return %c0_i32, %c0_i32_0, %c0_i32_1 : i32, i32, i32
  }
  func.func @transform_4(%arg0: i32) -> (i32, i32) {
    %c0_i32 = arith.constant 0 : i32
    %c0_i32_0 = arith.constant 0 : i32
    %c0_i32_1 = arith.constant 0 : i32
    return %c0_i32, %c0_i32_0 : i32, i32
  }
  func.func @transform_5(%arg0: i32) -> (i32, i32) {
    %c0_i32 = arith.constant 0 : i32
    %c0_i32_0 = arith.constant 0 : i32
    %c0_i32_1 = arith.constant 0 : i32
    return %c0_i32, %c0_i32_0 : i32, i32
  }
  func.func @transform_6(%arg0: i32) -> (i32, i32) {
    %c0_i32 = arith.constant 0 : i32
    %c0_i32_0 = arith.constant 0 : i32
    %c0_i32_1 = arith.constant 0 : i32
    return %c0_i32, %c0_i32_0 : i32, i32
  }
  func.func @transform_7(%arg0: i32) -> (i32, i32) {
    %c0_i32 = arith.constant 0 : i32
    %c0_i32_0 = arith.constant 0 : i32
    %c0_i32_1 = arith.constant 0 : i32
    return %c0_i32, %c0_i32_0 : i32, i32
  }
  func.func @transform_8(%arg0: i32) -> (i32, i32, i32) {
    %c0_i32 = arith.constant 0 : i32
    %c0_i32_0 = arith.constant 0 : i32
    %c0_i32_1 = arith.constant 0 : i32
    %c0_i32_2 = arith.constant 0 : i32
    return %c0_i32, %c0_i32_0, %c0_i32_1 : i32, i32, i32
  }
  func.func @transform_9(%arg0: i32) -> (i32, i32) {
    %c0_i32 = arith.constant 0 : i32
    %c0_i32_0 = arith.constant 0 : i32
    %c0_i32_1 = arith.constant 0 : i32
    return %c0_i32, %c0_i32_0 : i32, i32
  }
  func.func @transform_10(%arg0: i32) -> (i32, i32) {
    %c0_i32 = arith.constant 0 : i32
    %c0_i32_0 = arith.constant 0 : i32
    %c0_i32_1 = arith.constant 0 : i32
    return %c0_i32, %c0_i32_0 : i32, i32
  }
  func.func @transform_11(%arg0: i32) -> (i32, i32) {
    %c0_i32 = arith.constant 0 : i32
    %c0_i32_0 = arith.constant 0 : i32
    %c0_i32_1 = arith.constant 0 : i32
    return %c0_i32, %c0_i32_0 : i32, i32
  }
  func.func @transform_12(%arg0: i32) -> (i32, i32) {
    %c0_i32 = arith.constant 0 : i32
    %c0_i32_0 = arith.constant 0 : i32
    %c0_i32_1 = arith.constant 0 : i32
    return %c0_i32, %c0_i32_0 : i32, i32
  }
  func.func @transform_13(%arg0: i32) -> (i32, i32) {
    %c0_i32 = arith.constant 0 : i32
    %c0_i32_0 = arith.constant 0 : i32
    %c0_i32_1 = arith.constant 0 : i32
    return %c0_i32, %c0_i32_0 : i32, i32
  }
  func.func @transform_14(%arg0: i32) -> (i32, i32) {
    %c0_i32 = arith.constant 0 : i32
    %c0_i32_0 = arith.constant 0 : i32
    %c0_i32_1 = arith.constant 0 : i32
    return %c0_i32, %c0_i32_0 : i32, i32
  }
  func.func @transform_15(%arg0: i32) -> (i32, i32) {
    %c0_i32 = arith.constant 0 : i32
    %c0_i32_0 = arith.constant 0 : i32
    return %arg0, %c0_i32 : i32, i32
  }
}

</mosaic_0001>

<bundles_post_ra>
// kernel: stacked_lstm_forward.1
= control target key start
LH: loop header
LB: loop body
LE: loop exit
PB: predicated region body
PF: predicated region fallthrough
CT: control target
= control target key end

     0   :  { %20 = vsyncpa [#allocation3], 0  ;;  %s4073_s0 = inlined_call_operand.vmem [shape: f32[16,8,4], index: 0, kind: input, shape index: {}]   ;;  %s4074_s1 = inlined_call_operand.hbm [shape: f32[1,4], index: 1, kind: input, shape index: {}]   ;;  %s4075_s2 = inlined_call_operand.hbm [shape: f32[1,4], index: 2, kind: input, shape index: {}]   ;;  %s4076_s3 = inlined_call_operand.hbm [shape: f32[3,4,96], index: 3, kind: input, shape index: {}]   ;;  %s4077_s4 = inlined_call_operand.hbm [shape: f32[1,96], index: 4, kind: input, shape index: {}]   ;;  %s4078_s5 = inlined_call_operand.vmem [shape: f32[96,256], index: 5, kind: input, shape index: {}]   ;;  %s4079_s6 = inlined_call_operand.vmem [shape: f32[64,256], index: 6, kind: input, shape index: {}]   ;;  %s4080_s7 = inlined_call_operand.vmem [shape: f32[1,256], index: 7, kind: input, shape index: {}]   ;;  %s4081_s8 = inlined_call_operand.vmem [shape: f32[2,64,32], index: 8, kind: input, shape index: {}]   ;;  %s4082_s9 = inlined_call_operand.hbm [shape: f32[1,32], index: 9, kind: input, shape index: {}]   ;;  %s4083_s10 = inlined_call_operand.vmem [shape: f32[32,64], index: 10, kind: input, shape index: {}]   ;;  %s4084_s11 = inlined_call_operand.vmem [shape: f32[16,64], index: 11, kind: input, shape index: {}]   ;;  %s4085_s12 = inlined_call_operand.vmem [shape: f32[1,64], index: 12, kind: input, shape index: {}]   ;;  %s4086_s13 = inlined_call_operand.hbm [shape: f32[16,128], index: 13, kind: input, shape index: {}]   ;;  %s4087_s14 = inlined_call_operand.hbm [shape: f32[1,128], index: 14, kind: input, shape index: {}]   ;;  %s4088_s15 = inlined_call_operand.vmem [shape: f32[8,128], index: 15, kind: output, shape index: {}]  }
   0x1   :  { %21 = vsyncpa [#allocation5], 0 }
   0x2   :  { %22 = vsyncpa [#allocation8], 0 }
   0x3   :  { %23 = vsyncpa [#allocation11], 0  ;;  %s3282_s18 = smov [#allocation4]   ;;  %s3283_s20 = smov [#allocation7]  }
   0x4   :  { %s42_s19 = sshll.u32 %s3282_s18, 4  ;;  %s64_s21 = sshll.u32 %s3283_s20, 4  ;;  %s43_s19 = int_to_ptr.vmem [resolvable:$true] %s42_s19  ;;  %s65_s21 = int_to_ptr.vmem [resolvable:$true] %s64_s21 }
   0x5   :  { %s3120_s24 = scalar_lea.hbm %s4075_s2, 16 }
   0x6   :  { %p3121_p0 = scmp.ne.s32.totalorder %s4075_s2, %s3120_s24  ;;  %p3124_p1 = scmp.lt.u32.totalorder %s3120_s24, %s4075_s2 }
   0x8   :  { %p3126_p2 = pnand %p3124_p1, %p3121_p0 }
   0xa   :  { %3129 = shalt.err (!%p3126_p2)
}
   0xb   :  { %s3130_s29 = scalar_lea.vmem %s43_s19, 16  ;;  %s3134_s30 = scalar_lea.vmem %s43_s19, 32 }
   0xc   :  { %p3131_p3 = scmp.ne.s32.totalorder %s43_s19, %s3130_s29  ;;  %p3135_p4 = scmp.lt.s32.totalorder %s43_s19, %s43_s19 }
   0xd   :  { %p3136_p5 = scmp.lt.s32.totalorder %s3134_s30, %s3130_s29 }
   0xf   :  { %p3137_p6 = por %p3136_p5, %p3135_p4 }
  0x11   :  { %p3138_p7 = pnand %p3137_p6, %p3131_p3 }
  0x13   :  { %3141 = shalt.err (!%p3138_p7)
}
  0x14   :  { %45 = dma.hbm_to_vmem [thread:$0]  %s4075_s2, 16, %s43_s19, [#allocation5]  }
  0x15   :  { %s3142_s22 = scalar_lea.hbm %s4077_s4, 16 }
  0x16   :  { %p3143_p8 = scmp.ne.s32.totalorder %s4077_s4, %s3142_s22  ;;  %p3146_p9 = scmp.lt.u32.totalorder %s3142_s22, %s4077_s4 }
  0x18   :  { %p3148_p10 = pnand %p3146_p9, %p3143_p8 }
  0x1a   :  { %3151 = shalt.err (!%p3148_p10)
}
  0x1b   :  { %s3152_s27 = scalar_lea.vmem %s65_s21, 16  ;;  %s3156_s28 = scalar_lea.vmem %s65_s21, 32 }
  0x1c   :  { %p3153_p11 = scmp.ne.s32.totalorder %s65_s21, %s3152_s27  ;;  %p3157_p12 = scmp.lt.s32.totalorder %s65_s21, %s65_s21 }
  0x1d   :  { %p3158_p13 = scmp.lt.s32.totalorder %s3156_s28, %s3152_s27 }
  0x1f   :  { %p3159_p0 = por %p3158_p13, %p3157_p12 }
  0x21   :  { %p3160_p1 = pnand %p3159_p0, %p3153_p11 }
  0x23   :  { %3163 = shalt.err (!%p3160_p1)
}
  0x24   :  { %67 = dma.hbm_to_vmem [thread:$0]  %s4077_s4, 16, %s65_s21, [#allocation8]  }
  0x25   :  { %s3284_s29 = smov [#allocation10]   ;;  %s3164_s18 = scalar_lea.hbm %s4086_s13, 256 }
  0x26   :  { %s97_s30 = sshll.u32 %s3284_s29, 4  ;;  %p3165_p2 = scmp.ne.s32.totalorder %s4086_s13, %s3164_s18  ;;  %s98_s30 = int_to_ptr.vmem [resolvable:$true] %s97_s30 }
  0x27   :  { %p3168_p3 = scmp.lt.u32.totalorder %s3164_s18, %s4086_s13 }
  0x29   :  { %p3170_p4 = pnand %p3168_p3, %p3165_p2 }
  0x2b   :  { %3173 = shalt.err (!%p3170_p4)
}
  0x2c   :  { %s3174_s25 = scalar_lea.vmem %s98_s30, 256  ;;  %p3179_p6 = scmp.lt.s32.totalorder %s98_s30, %s98_s30 }
  0x2d   :  { %p3175_p5 = scmp.ne.s32.totalorder %s98_s30, %s3174_s25  ;;  %p3180_p7 = scmp.lt.s32.totalorder %s3174_s25, %s3174_s25 }
  0x2f   :  { %p3181_p8 = por %p3180_p7, %p3179_p6 }
  0x31   :  { %p3182_p9 = pnand %p3181_p8, %p3175_p5 }
  0x33   :  { %3185 = shalt.err (!%p3182_p9)
}
  0x34   :  { %s3285_s4 = smov 128   ;;  %s3286_s21 = smov 8  }
  0x35   :  { %103 = dma.hbm_to_vmem [thread:$0]  %s4086_s13, 256, %s98_s30, [#allocation11], %s3285_s4, %s3285_s4, %s3286_s21  }
  0x36   :  { %s3287_s28 = smov [#allocation2]   ;;  %s3288_s19 = smov [#allocation6]  }
  0x37   :  { %s32_s2 = sshll.u32 %s3287_s28, 4  ;;  %s51_s29 = sshll.u32 %s3288_s19, 4  ;;  %s33_s2 = int_to_ptr.vmem [resolvable:$true] %s32_s2  ;;  %s52_s29 = int_to_ptr.vmem [resolvable:$true] %s51_s29 }
  0x38   :  { %s3186_s18 = scalar_lea.hbm %s4074_s1, 16 }
  0x39   :  { %p3187_p10 = scmp.ne.s32.totalorder %s4074_s1, %s3186_s18  ;;  %p3190_p11 = scmp.lt.u32.totalorder %s3186_s18, %s4074_s1 }
  0x3b   :  { %p3192_p12 = pnand %p3190_p11, %p3187_p10 }
  0x3d   :  { %3195 = shalt.err (!%p3192_p12)
}
  0x3e   :  { %s3196_s13 = scalar_lea.vmem %s33_s2, 16  ;;  %s3200_s30 = scalar_lea.vmem %s33_s2, 32 }
  0x3f   :  { %p3197_p13 = scmp.ne.s32.totalorder %s33_s2, %s3196_s13  ;;  %p3201_p0 = scmp.lt.s32.totalorder %s33_s2, %s33_s2 }
  0x40   :  { %p3202_p1 = scmp.lt.s32.totalorder %s3200_s30, %s3196_s13 }
  0x42   :  { %p3203_p2 = por %p3202_p1, %p3201_p0 }
  0x44   :  { %p3204_p3 = pnand %p3203_p2, %p3197_p13 }
  0x46   :  { %3207 = shalt.err (!%p3204_p3)
}
  0x47   :  { %35 = dma.hbm_to_vmem [thread:$0]  %s4074_s1, 16, %s33_s2, [#allocation3]  }
  0x48   :  { %s3208_s27 = scalar_lea.hbm %s4076_s3, 192 }
  0x49   :  { %p3209_p4 = scmp.ne.s32.totalorder %s4076_s3, %s3208_s27  ;;  %p3212_p5 = scmp.lt.u32.totalorder %s3208_s27, %s4076_s3 }
  0x4b   :  { %p3214_p6 = pnand %p3212_p5, %p3209_p4 }
  0x4d   :  { %3217 = shalt.err (!%p3214_p6)
}
  0x4e   :  { %s3218_s18 = scalar_lea.vmem %s52_s29, 192  ;;  %p3223_p8 = scmp.lt.s32.totalorder %s52_s29, %s52_s29 }
  0x4f   :  { %p3219_p7 = scmp.ne.s32.totalorder %s52_s29, %s3218_s18  ;;  %p3224_p9 = scmp.lt.s32.totalorder %s3218_s18, %s3218_s18 }
  0x51   :  { %p3225_p10 = por %p3224_p9, %p3223_p8 }
  0x53   :  { %p3226_p11 = pnand %p3225_p10, %p3219_p7 }
  0x55   :  { %3229 = shalt.err (!%p3226_p11)
}
  0x56   :  { %s3289_s1 = smov 64   ;;  %s3290_s2 = smov 4  }
  0x57   :  { %57 = dma.hbm_to_vmem [thread:$0]  %s4076_s3, 192, %s52_s29, [#allocation5], %s3289_s1, %s3289_s1, %s3290_s2  }
  0x58   :  { %s3291_s23 = smov [#allocation9]   ;;  %s3292_s13 = smov [#allocation12]  }
  0x59   :  { %s82_s24 = sshll.u32 %s3291_s23, 4  ;;  %s110_s30 = sshll.u32 %s3292_s13, 4  ;;  %s83_s24 = int_to_ptr.vmem [resolvable:$true] %s82_s24  ;;  %s111_s30 = int_to_ptr.vmem [resolvable:$true] %s110_s30 }
  0x5a   :  { %s3230_s21 = scalar_lea.hbm %s4082_s9, 16 }
  0x5b   :  { %p3231_p12 = scmp.ne.s32.totalorder %s4082_s9, %s3230_s21  ;;  %p3234_p13 = scmp.lt.u32.totalorder %s3230_s21, %s4082_s9 }
  0x5d   :  { %p3236_p0 = pnand %p3234_p13, %p3231_p12 }
  0x5f   :  { %3239 = shalt.err (!%p3236_p0)
}
  0x60   :  { %s3240_s3 = scalar_lea.vmem %s83_s24, 16  ;;  %s3244_s29 = scalar_lea.vmem %s83_s24, 32 }
  0x61   :  { %p3241_p1 = scmp.ne.s32.totalorder %s83_s24, %s3240_s3  ;;  %p3245_p2 = scmp.lt.s32.totalorder %s83_s24, %s83_s24 }
  0x62   :  { %p3246_p3 = scmp.lt.s32.totalorder %s3244_s29, %s3240_s3 }
  0x64   :  { %p3247_p4 = por %p3246_p3, %p3245_p2 }
  0x66   :  { %p3248_p5 = pnand %p3247_p4, %p3241_p1 }
  0x68   :  { %3251 = shalt.err (!%p3248_p5)
}
  0x69   :  { %85 = dma.hbm_to_vmem [thread:$0]  %s4082_s9, 16, %s83_s24, [#allocation8]  }
  0x6a   :  { %s3252_s20 = scalar_lea.hbm %s4087_s14, 16 }
  0x6b   :  { %p3253_p6 = scmp.ne.s32.totalorder %s4087_s14, %s3252_s20  ;;  %p3256_p7 = scmp.lt.u32.totalorder %s3252_s20, %s4087_s14 }
  0x6d   :  { %p3258_p8 = pnand %p3256_p7, %p3253_p6 }
  0x6f   :  { %3261 = shalt.err (!%p3258_p8)
}
  0x70   :  { %s3262_s4 = scalar_lea.vmem %s111_s30, 16  ;;  %s3266_s21 = scalar_lea.vmem %s111_s30, 32 }
  0x71   :  { %p3263_p9 = scmp.ne.s32.totalorder %s111_s30, %s3262_s4  ;;  %p3267_p10 = scmp.lt.s32.totalorder %s111_s30, %s111_s30 }
  0x72   :  { %p3268_p11 = scmp.lt.s32.totalorder %s3266_s21, %s3262_s4 }
  0x74   :  { %p3269_p12 = por %p3268_p11, %p3267_p10 }
  0x76   :  { %p3270_p13 = pnand %p3269_p12, %p3263_p9 }
  0x78   :  { %3273 = shalt.err (!%p3270_p13)
}
  0x79   :  { %113 = dma.hbm_to_vmem [thread:$0]  %s4087_s14, 16, %s111_s30, [#allocation11]  }
  0x7a   :  { %3274 = dma.done.wait [#allocation3], 16  }
  0x7b   :  { %3275 = vsyncadd [#allocation3], 4294967280 }
  0x7c   :  { %3276 = dma.done.wait [#allocation5], 208  }
  0x7d   :  { %3277 = vsyncadd [#allocation5], 4294967088 }
  0x7e   :  { %3278 = dma.done.wait [#allocation8], 32  }
  0x7f   :  { %3279 = vsyncadd [#allocation8], 4294967264 }
  0x80   :  { %3280 = dma.done.wait [#allocation11], 272  }
  0x81   :  { %3281 = vsyncadd [#allocation11], 4294967024  ;;  %vm243_vm0 = vcmask 1043456   ;;  %v199_v0 = vld [vmem:[#allocation6 + $0x4] sm:$0xf]  ;;  %v136_v1 = vld [vmem:[%s4073_s0 + $0x8] sm:$0xff] }
  0x82   :  { %v3468_v2 = vld [vmem:[#allocation2] ss:$0 sm:$0xff]  ;;  %2572 = vmatprep.subr.msk.mxu0 %vm243_vm0, %v199_v0  ;;  %v3472_v4 = vld [vmem:[#allocation4] ss:$0 sm:$0xff]  ;;  %v197_v5 = vld [vmem:[#allocation6] sm:$0xf] }
  0x83   :  { %v159_v3 = vmul.f32 %v3468_v2, %v136_v1  ;;  %v137_v6 = vld [vmem:[%s4073_s0 + $0x10] sm:$0xff]  ;;  %2573 = vmatpush3.msk.msra.mxu0 %vm243_vm0, %v199_v0  ;;  %vm200_vm1 = vcmask 31744   ;;  %v138_v8 = vld [vmem:[%s4073_s0 + $0x18] sm:$0xff]  ;;  %v139_v9 = vld [vmem:[%s4073_s0 + $0x20] sm:$0xff]  ;;  %vm758_vm2 = vcmask 785408   ;;  %vm903_vm3 = vcmask 523264  }
  0x84   :  { %v160_v7 = vmul.f32 %v3468_v2, %v137_v6  ;;  %v140_v10 = vld [vmem:[%s4073_s0 + $0x28] sm:$0xff]  ;;  %2595 = vmatprep.subr.msk.mxu0 %vm243_vm0, %v197_v5  ;;  %v161_v12 = vmul.f32 %v3468_v2, %v138_v8  ;;  %v162_v13 = vmul.f32 %v3468_v2, %v139_v9  ;;  %v141_v15 = vld [vmem:[%s4073_s0 + $0x30] sm:$0xff]  ;;  %v142_v17 = vld [vmem:[%s4073_s0 + $0x38] sm:$0xff]  ;;  %vm3295_vm4 = vmmov 0   ;;  %s3296_s9 = smov 80  }
  0x85   :  { %v3489_v11 = vadd.f32 %v3472_v4, %v159_v3  ;;  %v163_v14 = vmul.f32 %v3468_v2, %v140_v10  ;;  %v143_v19 = vld [vmem:[%s4073_s0 + $0x40] sm:$0xff]  ;;  %v164_v21 = vmul.f32 %v3468_v2, %v141_v15  ;;  %v144_v22 = vld [vmem:[%s4073_s0 + $0x48] sm:$0xff]  ;;  %v3521_v23 = vld [vmem:[#allocation6 + $0x8] sm:$0xf]  ;;  %v165_v26 = vmul.f32 %v3468_v2, %v142_v17 }
  0x86   :  { %v3499_v16 = vadd.f32 %v3472_v4, %v160_v7  ;;  %v3507_v18 = vadd.f32 %v3472_v4, %v161_v12  ;;  %v3515_v20 = vadd.f32 %v3472_v4, %v162_v13  ;;  %v150_v24 = vld [vmem:[%s4073_s0 + $0x78] sm:$0xff]  ;;  %v723_v27 = vld [vmem:[%s4078_s5 + $0x8] sm:$0xff]  ;;  %v722_v29 = vld [vmem:[%s4078_s5] sm:$0xff]  ;;  %v166_v38 = vmul.f32 %v3468_v2, %v143_v19 }
  0x87   :  { %2574 = vmatprep.mubr.msk.f32.mxu0 %vm200_vm1, %v3489_v11  ;;  %v3530_v25 = vadd.f32 %v3472_v4, %v163_v14  ;;  %v725_v28 = vld [vmem:[%s4078_s5 + $0x18] sm:$0xff]  ;;  %v724_v30 = vld [vmem:[%s4078_s5 + $0x10] sm:$0xff]  ;;  %v727_v31 = vld [vmem:[%s4078_s5 + $0x28] sm:$0xff]  ;;  %v173_v33 = vmul.f32 %v3468_v2, %v150_v24  ;;  %v3563_v37 = vadd.f32 %v3472_v4, %v164_v21  ;;  %v167_v39 = vmul.f32 %v3468_v2, %v144_v22 }
  0x88   :  { %2575 = vmatmul.mubr.msk.f32.vlgmr.msra.gmra.mrb[0].mxu0 %vm200_vm1, %v3499_v16  ;;  %v729_v32 = vld [vmem:[%s4078_s5 + $0x38] sm:$0xff]  ;;  %v2736_v34 = vpack.c.bf16 %v725_v28, %v723_v27  ;;  %v726_v35 = vld [vmem:[%s4078_s5 + $0x20] sm:$0xff]  ;;  %v728_v36 = vld [vmem:[%s4078_s5 + $0x30] sm:$0xff]  ;;  %v2738_v40 = vpack.c.bf16 %v724_v30, %v722_v29  ;;  %v3576_v43 = vadd.f32 %v3472_v4, %v165_v26  ;;  %v3596_v52 = vadd.f32 %v3472_v4, %v166_v38 }
  0x89   :  { %2596 = vmatpush3.msk.msra.mxu0 %vm243_vm0, %v197_v5  ;;  %2577 = vmatprep.mubr.msk.f32.mxu0 %vm200_vm1, %v3507_v18  ;;  %v731_v41 = vld [vmem:[%s4078_s5 + $0x48] sm:$0xff]  ;;  %v733_v42 = vld [vmem:[%s4078_s5 + $0x58] sm:$0xff]  ;;  %v145_v44 = vld [vmem:[%s4073_s0 + $0x50] sm:$0xff]  ;;  %v3582_v45 = vadd.f32 %v3472_v4, %v173_v33  ;;  %v2740_v46 = vpack.c.bf16 %v729_v32, %v727_v31  ;;  %v2742_v48 = vpack.c.bf16 %v728_v36, %v726_v35  ;;  %vm1889_vm5 = vcmask 261120  }
  0x8a   :  { %2618 = vmatprep.subr.msk.mxu0 %vm243_vm0, %v3521_v23  ;;  %2737 = vmatprep.subr.bf16.mxu1 %v2736_v34  ;;  %v146_v47 = vld [vmem:[%s4073_s0 + $0x58] sm:$0xff]  ;;  %v2744_v49 = vpack.c.bf16 %v733_v42, %v731_v41  ;;  %v730_v50 = vld [vmem:[%s4078_s5 + $0x40] sm:$0xff]  ;;  %v732_v51 = vld [vmem:[%s4078_s5 + $0x50] sm:$0xff]  ;;  %v168_v53 = vmul.f32 %v3468_v2, %v145_v44  ;;  %v190_v56 = vadd.f32 %v3472_v4, %v167_v39  ;;  %vm1981_vm6 = vcmask 130048  }
  0x8b   :  { %2739 = vmatpush1.bf16.msra.mxu1 %v2738_v40  ;;  %v735_v54 = vld [vmem:[%s4078_s5 + $0x68] sm:$0xff]  ;;  %v737_v55 = vld [vmem:[%s4078_s5 + $0x78] sm:$0xff]  ;;  %v169_v57 = vmul.f32 %v3468_v2, %v146_v47  ;;  %v147_v58 = vld [vmem:[%s4073_s0 + $0x60] sm:$0xff]  ;;  %v2746_v60 = vpack.c.bf16 %v732_v51, %v730_v50 }
  0x8c   :  { %2578 = vmatmul.mubr.msk.f32.gmra.mrb[2].mxu0 %vm200_vm1, %v3515_v20  ;;  %2741 = vmatprep.subr.bf16.mxu1 %v2740_v46  ;;  %v148_v59 = vld [vmem:[%s4073_s0 + $0x68] sm:$0xff]  ;;  %v2748_v61 = vpack.c.bf16 %v737_v55, %v735_v54  ;;  %v734_v62 = vld [vmem:[%s4078_s5 + $0x60] sm:$0xff]  ;;  %v736_v63 = vld [vmem:[%s4078_s5 + $0x70] sm:$0xff]  ;;  %v191_v0 = vadd.f32 %v3472_v4, %v168_v53  ;;  %v170_v1 = vmul.f32 %v3468_v2, %v147_v58 }
  0x8d   :  { %2580 = vmatprep.mubr.msk.f32.mxu0 %vm200_vm1, %v3530_v25  ;;  %v739_v3 = vld [vmem:[%s4078_s5 + $0x88] sm:$0xff]  ;;  %v741_v5 = vld [vmem:[%s4078_s5 + $0x98] sm:$0xff]  ;;  %v192_v6 = vadd.f32 %v3472_v4, %v169_v57  ;;  %v171_v7 = vmul.f32 %v3468_v2, %v148_v59  ;;  %v149_v8 = vld [vmem:[%s4073_s0 + $0x70] sm:$0xff]  ;;  %v2750_v10 = vpack.c.bf16 %v736_v63, %v734_v62 }
  0x8e   :  { %v135_v9 = vld [vmem:[%s4073_s0] sm:$0xff]  ;;  %v2752_v12 = vpack.c.bf16 %v741_v5, %v739_v3  ;;  %v193_v13 = vadd.f32 %v3472_v4, %v170_v1  ;;  %v172_v14 = vmul.f32 %v3468_v2, %v149_v8  ;;  %v888_v26 = vld [vmem:[%s4079_s6 + $0x8] sm:$0xff]  ;;  %v890_v27 = vld [vmem:[%s4079_s6 + $0x18] sm:$0xff] }
  0x8f   :  { %2743 = vmatpush1.bf16.msra.mxu1 %v2742_v48  ;;  %v194_v15 = vadd.f32 %v3472_v4, %v171_v7  ;;  %v158_v17 = vmul.f32 %v3468_v2, %v135_v9  ;;  %v738_v2 = vld [vmem:[%s4078_s5 + $0x80] sm:$0xff]  ;;  %v3722_v28 = vpack.c.bf16 %v890_v27, %v888_v26  ;;  %v889_v35 = vld [vmem:[%s4079_s6 + $0x10] sm:$0xff]  ;;  %v894_v38 = vld [vmem:[%s4079_s6 + $0x38] sm:$0xff] }
  0x90   :  { %2581 = vmatmul.mubr.msk.f32.gmra.mrb[4].mxu0 %vm200_vm1, %v3563_v37  ;;  %2745 = vmatprep.subr.bf16.mxu1 %v2744_v49  ;;  %v195_v19 = vadd.f32 %v3472_v4, %v172_v14  ;;  %v742_v22 = vld [vmem:[%s4078_s5 + $0xa0] sm:$0xff]  ;;  %v893_v48 = vld [vmem:[%s4079_s6 + $0x30] sm:$0xff]  ;;  %v896_v50 = vld [vmem:[%s4079_s6 + $0x48] sm:$0xff] }
  0x91   :  { %2583 = vmatprep.mubr.msk.f32.mxu0 %vm200_vm1, %v3576_v43  ;;  %v181_v21 = vadd.f32 %v3472_v4, %v158_v17  ;;  %v740_v4 = vld [vmem:[%s4078_s5 + $0x90] sm:$0xff]  ;;  %v3725_v29 = vld [vmem:[#allocation7] ss:$0 sm:$0xff]  ;;  %v898_v51 = vld [vmem:[%s4079_s6 + $0x58] sm:$0xff] }
  0x92   :  { %v887_v34 = vld [vmem:[%s4079_s6] sm:$0xff]  ;;  %v3767_v59 = vpack.c.bf16 %v898_v51, %v896_v50  ;;  %v900_v63 = vld [vmem:[%s4079_s6 + $0x68] sm:$0xff] }
  0x93   :  { %2747 = vmatpush1.bf16.msra.mxu1 %v2746_v60  ;;  %v891_v47 = vld [vmem:[%s4079_s6 + $0x20] sm:$0xff] }
  0x94   :  { %2584 = vmatmul.mubr.msk.f32.gmra.mrb[6].mxu0 %vm200_vm1, %v3596_v52  ;;  %2749 = vmatprep.subr.bf16.mxu1 %v2748_v61  ;;  %v895_v60 = vld [vmem:[%s4079_s6 + $0x40] sm:$0xff]  ;;  %v897_v61 = vld [vmem:[%s4079_s6 + $0x50] sm:$0xff] }
  0x95   :  { %2586 = vmatprep.mubr.msk.f32.mxu0 %vm200_vm1, %v190_v56  ;;  %v3785_v7 = vpack.c.bf16 %v897_v61, %v895_v60 }
  0x97   :  { %2751 = vmatpush1.bf16.msra.mxu1 %v2750_v10 }
  0x98   :  { %2587 = vmatmul.mubr.msk.f32.gmra.mrb[8].mxu0 %vm200_vm1, %v191_v0  ;;  %2753 = vmatprep.subr.bf16.mxu1 %v2752_v12  ;;  %v899_v12 = vld [vmem:[%s4079_s6 + $0x60] sm:$0xff] }
  0x99   :  { %2589 = vmatprep.mubr.msk.f32.mxu0 %vm200_vm1, %v192_v6 }
  0x9c   :  { %2590 = vmatmul.mubr.msk.f32.gmra.mrb[10].mxu0 %vm200_vm1, %v193_v13 }
  0x9d   :  { %2592 = vmatprep.mubr.msk.f32.mxu0 %vm200_vm1, %v194_v15 }
  0xa0   :  { %2593 = vmatmul.mubr.msk.f32.gmra.mrb[12].mxu0 %vm200_vm1, %v195_v19 }
  0xa1   :  { %2597 = vmatprep.mubr.msk.f32.mxu0 %vm200_vm1, %v181_v21 }
  0xa4   :  { %2598 = vmatmul.mubr.msk.f32.vlgmr.msra.gmra.mrb[0].mxu0 %vm200_vm1, %v3489_v11  ;;  %v2754_v11 = vpack.c.bf16 %v740_v4, %v738_v2 }
  0xa5   :  { %2619 = vmatpush3.msk.msra.mxu0 %vm243_vm0, %v3521_v23  ;;  %2600 = vmatprep.mubr.msk.f32.mxu0 %vm200_vm1, %v3499_v16  ;;  %v744_v23 = vld [vmem:[%s4078_s5 + $0xb0] sm:$0xff] }
  0xa6   :  { %2755 = vmatpush1.bf16.msra.mxu1 %v2754_v11  ;;  %v2758_v24 = vpack.c.bf16 %v744_v23, %v742_v22 }
  0xa8   :  { %2601 = vmatmul.mubr.msk.f32.gmra.mrb[2].mxu0 %vm200_vm1, %v3507_v18 }
  0xa9   :  { %2603 = vmatprep.mubr.msk.f32.mxu0 %vm200_vm1, %v3515_v20 }
  0xac   :  { %2604 = vmatmul.mubr.msk.f32.gmra.mrb[4].mxu0 %vm200_vm1, %v3530_v25 }
  0xad   :  { %2606 = vmatprep.mubr.msk.f32.mxu0 %vm200_vm1, %v3563_v37 }
  0xb0   :  { %2607 = vmatmul.mubr.msk.f32.gmra.mrb[6].mxu0 %vm200_vm1, %v3576_v43 }
  0xb1   :  { %2609 = vmatprep.mubr.msk.f32.mxu0 %vm200_vm1, %v3596_v52 }
  0xb4   :  { %2610 = vmatmul.mubr.msk.f32.gmra.mrb[8].mxu0 %vm200_vm1, %v190_v56 }
  0xb5   :  { %2612 = vmatprep.mubr.msk.f32.mxu0 %vm200_vm1, %v191_v0 }
  0xb8   :  { %2613 = vmatmul.mubr.msk.f32.gmra.mrb[10].mxu0 %vm200_vm1, %v192_v6 }
  0xb9   :  { %2615 = vmatprep.mubr.msk.f32.mxu0 %vm200_vm1, %v193_v13 }
  0xbc   :  { %2616 = vmatmul.mubr.msk.f32.gmra.mrb[12].mxu0 %vm200_vm1, %v194_v15 }
  0xbd   :  { %2620 = vmatprep.mubr.msk.f32.mxu0 %vm200_vm1, %v3499_v16  ;;  %v743_v16 = vld [vmem:[%s4078_s5 + $0xa8] sm:$0xff] }
  0xc0   :  { %2621 = vmatmul.mubr.msk.f32.vlgmr.msra.gmra.mrb[0].mxu0 %vm200_vm1, %v3507_v18  ;;  %v745_v18 = vld [vmem:[%s4078_s5 + $0xb8] sm:$0xff]  ;;  %s3297_s5 = smov 16  }
  0xc1   :  { %2623 = vmatprep.mubr.msk.f32.mxu0 %vm200_vm1, %v3515_v20  ;;  %v2756_v20 = vpack.c.bf16 %v745_v18, %v743_v16 }
  0xc3   :  { %2757 = vmatprep.subr.bf16.mxu1 %v2756_v20 }
  0xc4   :  { %2624 = vmatmul.mubr.msk.f32.gmra.mrb[2].mxu0 %vm200_vm1, %v3530_v25  ;;  %2759 = vmatpush1.bf16.msra.mxu1 %v2758_v24  ;;  %v3293_v25 = vmov 0.0  }
  0xc5   :  { %2626 = vmatprep.mubr.msk.f32.mxu0 %vm200_vm1, %v3563_v37  ;;  %844 = vmatprep.mubr.f32.mxu1 %v3293_v25  ;;  %v892_v37 = vld [vmem:[%s4079_s6 + $0x28] sm:$0xff] }
  0xc6   :  { %2761 = vmatprep.subr.bf16.mxu1 %v3722_v28  ;;  %v3745_v46 = vpack.c.bf16 %v894_v38, %v892_v37 }
  0xc8   :  { %2627 = vmatmul.mubr.msk.f32.gmra.mrb[4].mxu0 %vm200_vm1, %v3576_v43  ;;  %v3742_v43 = vpack.c.bf16 %v889_v35, %v887_v34 }
  0xc9   :  { %2629 = vmatprep.mubr.msk.f32.mxu0 %vm200_vm1, %v3596_v52 }
  0xcc   :  { %2630 = vmatmul.mubr.msk.f32.gmra.mrb[6].mxu0 %vm200_vm1, %v190_v56  ;;  %v3763_v56 = vpack.c.bf16 %v893_v48, %v891_v47 }
  0xcd   :  { %2632 = vmatprep.mubr.msk.f32.mxu0 %vm200_vm1, %v191_v0  ;;  %v902_v0 = vld [vmem:[%s4079_s6 + $0x78] sm:$0xff] }
  0xce   :  { %v3789_v10 = vpack.c.bf16 %v902_v0, %v900_v63 }
  0xd0   :  { %2633 = vmatmul.mubr.msk.f32.gmra.mrb[8].mxu0 %vm200_vm1, %v192_v6 }
  0xd1   :  { %2635 = vmatprep.mubr.msk.f32.mxu0 %vm200_vm1, %v193_v13  ;;  %v901_v13 = vld [vmem:[%s4079_s6 + $0x70] sm:$0xff] }
  0xd2   :  { %v3801_v2 = vpack.c.bf16 %v901_v13, %v899_v12 }
  0xd4   :  { %2636 = vmatmul.mubr.msk.f32.gmra.mrb[10].mxu0 %vm200_vm1, %v194_v15 }
  0xd5   :  { %2638 = vmatprep.mubr.msk.f32.mxu0 %vm200_vm1, %v195_v19 }
  0xd8   :  { %2639 = vmatmul.mubr.msk.f32.gmra.mrb[12].mxu0 %vm200_vm1, %v3582_v45 }
 0x193   :  { %v2622_v30 = vpop.f32.mrb[0].mxu0 }
 0x194   :  { %v688_v31 = vadd.f32 %v2622_v30, %v3725_v29  ;;  %v597_v32 = vpop.f32.mrb[1].mxu0 }
 0x195   :  { %v687_v33 = vadd.f32 %v3725_v29, %v597_v32 }
 0x196   :  { %v702_v36 = vmax.f32 %v688_v31, 0.0 }
 0x197   :  { %v701_v39 = vmax.f32 %v687_v33, 0.0  ;;  %v2625_v40 = vpop.f32.mrb[2].mxu0 }
 0x198   :  { %v690_v41 = vadd.f32 %v2625_v40, %v3725_v29  ;;  %v607_v42 = vpop.f32.mrb[3].mxu0 }
 0x199   :  { %v715_v44 = vmax.f32 %v701_v39, %v702_v36  ;;  %v689_v45 = vadd.f32 %v3725_v29, %v607_v42 }
 0x19a   :  { %v704_v49 = vmax.f32 %v690_v41, 0.0  ;;  %v746_v41 = vld [vmem:[%s4080_s7] sm:$0x3] }
 0x19b   :  { %v703_v52 = vmax.f32 %v689_v45, 0.0  ;;  %v2628_v53 = vpop.f32.mrb[4].mxu0  ;;  %2421 = vmatmul.mubr.msk.f32.vlgmr.msra.gmra.mrb[0].mxu1 %vm758_vm2, %v715_v44 }
 0x19c   :  { %v692_v54 = vadd.f32 %v2628_v53, %v3725_v29  ;;  %2763 = vmatpush1.bf16.msra.mxu1 %v3742_v43  ;;  %v617_v55 = vpop.f32.mrb[5].mxu0  ;;  %850 = vmatprep.mubr.f32.mxu1 %v3293_v25 }
 0x19d   :  { %v716_v57 = vmax.f32 %v703_v52, %v704_v49  ;;  %v691_v58 = vadd.f32 %v3725_v29, %v617_v55  ;;  %2765 = vmatprep.subr.bf16.mxu1 %v3745_v46 }
 0x19e   :  { %v706_v62 = vmax.f32 %v692_v54, 0.0 }
 0x19f   :  { %v705_v1 = vmax.f32 %v691_v58, 0.0  ;;  %v2631_v3 = vpop.f32.mrb[6].mxu0  ;;  %2422 = vmatmul.mubr.msk.f32.gmra.mrb[2].mxu1 %vm758_vm2, %v716_v57 }
 0x1a0   :  { %v694_v5 = vadd.f32 %v2631_v3, %v3725_v29  ;;  %v627_v6 = vpop.f32.mrb[7].mxu0  ;;  %856 = vmatprep.mubr.f32.mxu1 %v3293_v25  ;;  %2767 = vmatpush1.bf16.msra.mxu1 %v3763_v56 }
 0x1a1   :  { %v717_v8 = vmax.f32 %v705_v1, %v706_v62  ;;  %v693_v9 = vadd.f32 %v3725_v29, %v627_v6  ;;  %2769 = vmatprep.subr.bf16.mxu1 %v3767_v59 }
 0x1a2   :  { %v708_v14 = vmax.f32 %v694_v5, 0.0 }
 0x1a3   :  { %v707_v15 = vmax.f32 %v693_v9, 0.0  ;;  %v2634_v17 = vpop.f32.mrb[8].mxu0  ;;  %2423 = vmatmul.mubr.msk.f32.gmra.mrb[4].mxu1 %vm758_vm2, %v717_v8 }
 0x1a4   :  { %v696_v19 = vadd.f32 %v2634_v17, %v3725_v29  ;;  %v637_v21 = vpop.f32.mrb[9].mxu0  ;;  %862 = vmatprep.mubr.f32.mxu1 %v3293_v25  ;;  %2771 = vmatpush1.bf16.msra.mxu1 %v3785_v7 }
 0x1a5   :  { %v718_v4 = vmax.f32 %v707_v15, %v708_v14  ;;  %v695_v11 = vadd.f32 %v3725_v29, %v637_v21  ;;  %2773 = vmatprep.subr.bf16.mxu1 %v3789_v10 }
 0x1a6   :  { %v710_v16 = vmax.f32 %v696_v19, 0.0 }
 0x1a7   :  { %v709_v18 = vmax.f32 %v695_v11, 0.0  ;;  %v2637_v20 = vpop.f32.mrb[10].mxu0  ;;  %2424 = vmatmul.mubr.msk.f32.gmra.mrb[6].mxu1 %vm758_vm2, %v718_v4 }
 0x1a8   :  { %v698_v22 = vadd.f32 %v2637_v20, %v3725_v29  ;;  %v647_v23 = vpop.f32.mrb[11].mxu0  ;;  %868 = vmatprep.mubr.f32.mxu1 %v3293_v25  ;;  %2775 = vmatpush1.bf16.msra.mxu1 %v3801_v2 }
 0x1a9   :  { %v719_v24 = vmax.f32 %v709_v18, %v710_v16  ;;  %v697_v26 = vadd.f32 %v3725_v29, %v647_v23  ;;  %2777 = vmatprep.subr.bf16.mxu1 %v3722_v28 }
 0x1aa   :  { %v712_v27 = vmax.f32 %v698_v22, 0.0 }
 0x1ab   :  { %v711_v30 = vmax.f32 %v697_v26, 0.0  ;;  %v2640_v31 = vpop.f32.mrb[12].mxu0  ;;  %2425 = vmatmul.mubr.msk.f32.gmra.mrb[8].mxu1 %vm758_vm2, %v719_v24 }
 0x1ac   :  { %v700_v32 = vadd.f32 %v2640_v31, %v3725_v29  ;;  %v657_v33 = vpop.f32.mrb[13].mxu0  ;;  %874 = vmatprep.mubr.f32.mxu1 %v3293_v25 }
 0x1ad   :  { %v720_v34 = vmax.f32 %v711_v30, %v712_v27  ;;  %v699_v35 = vadd.f32 %v3725_v29, %v657_v33  ;;  %v748_v29 = vlaneseq }
 0x1ae   :  { %v714_v36 = vmax.f32 %v700_v32, 0.0 }
 0x1af   :  { %v713_v37 = vmax.f32 %v699_v35, 0.0  ;;  %2426 = vmatmul.mubr.msk.f32.gmra.mrb[10].mxu1 %vm758_vm2, %v720_v34  ;;  %v749_v39 = vshrl.u32 %v748_v29, 7 }
 0x1b0   :  { %880 = vmatprep.mubr.f32.mxu1 %v3293_v25 }
 0x1b1   :  { %v721_v38 = vmax.f32 %v713_v37, %v714_v36  ;;  %v754_v40 = vsub.s32 1, %v749_v39  ;;  %v750_v49 = vsub.s32 0, %v749_v39 }
 0x1b3   :  { %2427 = vmatmul.mubr.msk.f32.gmra.mrb[12].mxu1 %vm758_vm2, %v721_v38  ;;  %v3832_v42 = vrot.slane %v746_v41, %v754_v40  ;;  %v3836_v50 = vrot.slane %v746_v41, %v750_v49 }
 0x1b4   :  { %971 = vmatprep.mubr.f32.mxu1 %v3293_v25 }
 0x1b7   :  { %972 = vmatmul.mubr.f32.vlgmr.msra.gmra.mrb[0].mxu1 %v3293_v25 }
 0x1b8   :  { %2779 = vmatpush1.bf16.msra.mxu1 %v3742_v43  ;;  %1077 = vmatprep.mubr.f32.mxu1 %v3293_v25 }
 0x1b9   :  { %2781 = vmatprep.subr.bf16.mxu1 %v3745_v46 }
 0x1bc   :  { %2783 = vmatpush1.bf16.msra.mxu1 %v3763_v56 }
 0x1bd   :  { %2785 = vmatprep.subr.bf16.mxu1 %v3767_v59 }
 0x1c0   :  { %2787 = vmatpush1.bf16.msra.mxu1 %v3785_v7 }
 0x1c1   :  { %2789 = vmatprep.subr.bf16.mxu1 %v3789_v10 }
 0x1c4   :  { %2791 = vmatpush1.bf16.msra.mxu1 %v3801_v2 }
 0x1c5   :  { %2793 = vmatprep.subr.bf16.mxu1 %v3722_v28 }
 0x28a   :  { %v973_v44 = vpop.f32.mrb[0].mxu1 }
 0x28b   :  { %v975_v45 = vpop.f32.mrb[1].mxu1  ;;  %v2922_v51 = vadd.f32 %v973_v44, %v3836_v50 }
 0x28c   :  { %v2923_v47 = vadd.f32 %v975_v45, %v3832_v42  ;;  %v2448_v45 = vld [vmem:[%s4081_s8 + $0x40] sm:$0xff] }
 0x28d   :  { %v2428_v52 = vmul.f32 -1.442695, %v2922_v51  ;;  %v2451_v51 = vld [vmem:[%s4081_s8 + $0x58] sm:$0xff] }
 0x28e   :  { %3010 = vtanh.f32 %v2923_v47  ;;  %v2429_v0 = vmul.f32 -1.442695, %v2923_v47  ;;  %v2449_v47 = vld [vmem:[%s4081_s8 + $0x48] sm:$0xff] }
 0x28f   :  { %3012 = vpow2.f32 %v2428_v52  ;;  %v2872_v49 = vpack.c.bf16 %v2449_v47, %v2448_v45 }
 0x291   :  { %2873 = vmatprep.subr.bf16.mxu0 %v2872_v49 }
 0x292   :  { %2875 = vmatpush3.bf16.msra.mxu0 %v2872_v49 }
 0x298   :  { %v3011_v48 = vpop.eup %3010 }
 0x299   :  { %995 = vrot.lane.b32.xlu0 %v3011_v48, %s3289_s1  ;;  %v3013_v53 = vpop.eup %3012  ;;  %v2450_v48 = vld [vmem:[%s4081_s8 + $0x50] sm:$0xff] }
 0x29a   :  { %v986_v54 = vadd.f32 1.0, %v3013_v53  ;;  %v2876_v52 = vpack.c.bf16 %v2451_v51, %v2450_v48  ;;  %v2452_v53 = vld [vmem:[%s4081_s8 + $0x60] sm:$0xff] }
 0x29c   :  { %3014 = vrcp.f32 %v986_v54  ;;  %v2453_v54 = vld [vmem:[%s4081_s8 + $0x68] sm:$0xff]  ;;  %2877 = vmatprep.subr.bf16.mxu0 %v2876_v52 }
 0x29d   :  { %2879 = vmatpush3.bf16.msra.mxu0 %v2876_v52 }
 0x2a6   :  { %v3015_v55 = vpop.eup %3014 }
 0x2a7   :  { %v993_v60 = vmul.f32 0.0, %v3015_v55 }
 0x30b   :  { %v996_v57 = vpop.permute.xlu0 %995 }
 0x30c   :  { %v998_v58 = vmul.f32 %v3015_v55, %v996_v57  ;;  %v2880_v55 = vpack.c.bf16 %v2453_v54, %v2452_v53  ;;  %v2454_v57 = vld [vmem:[%s4081_s8 + $0x70] sm:$0xff] }
 0x30e   :  { %1000 = vrot.lane.b32.xlu0 %v998_v58, %s3289_s1  ;;  %v2455_v58 = vld [vmem:[%s4081_s8 + $0x78] sm:$0xff]  ;;  %2881 = vmatprep.subr.bf16.mxu0 %v2880_v55 }
 0x30f   :  { %2883 = vmatpush3.bf16.msra.mxu0 %v2880_v55 }
 0x380   :  { %v1001_v61 = vpop.permute.xlu0 %1000 }
 0x381   :  { %v1003_v62 = vadd.f32 %v1001_v61, %v993_v60  ;;  %v2884_v60 = vpack.c.bf16 %v2455_v58, %v2454_v57 }
 0x383   :  { %3016 = vtanh.f32 %v1003_v62  ;;  %2885 = vmatprep.subr.bf16.mxu0 %v2884_v60 }
 0x384   :  { %3018 = vpow2.f32 %v2429_v0  ;;  %2887 = vmatpush3.bf16.msra.mxu0 %v2884_v60 }
 0x38d   :  { %v3017_v63 = vpop.eup %3016 }
 0x38e   :  { %1006 = vrot.lane.b32.xlu1 %v3017_v63, %s3289_s1  ;;  %v3019_v1 = vpop.eup %3018 }
 0x38f   :  { %v987_v3 = vadd.f32 1.0, %v3019_v1 }
 0x391   :  { %3020 = vrcp.f32 %v987_v3 }
 0x39b   :  { %v3021_v5 = vpop.eup %3020 }
 0x400   :  { %v1007_v6 = vpop.permute.xlu1 %1006 }
 0x401   :  { %v3841_v8 = vmul.f32 %v3021_v5, %v1007_v6 }
 0x403   :  { %2430 = vmatmul.mubr.msk.f32.vlgmr.msra.gmra.mrb[2].mxu1 %vm903_vm3, %v3841_v8 }
 0x404   :  { %2795 = vmatpush1.bf16.msra.mxu1 %v3742_v43  ;;  %1183 = vmatprep.mubr.f32.mxu1 %v3293_v25 }
 0x405   :  { %2797 = vmatprep.subr.bf16.mxu1 %v3745_v46 }
 0x408   :  { %2799 = vmatpush1.bf16.msra.mxu1 %v3763_v56 }
 0x409   :  { %2801 = vmatprep.subr.bf16.mxu1 %v3767_v59 }
 0x40c   :  { %2803 = vmatpush1.bf16.msra.mxu1 %v3785_v7 }
 0x40d   :  { %2805 = vmatprep.subr.bf16.mxu1 %v3789_v10 }
 0x410   :  { %2807 = vmatpush1.bf16.msra.mxu1 %v3801_v2 }
 0x411   :  { %2809 = vmatprep.subr.bf16.mxu1 %v3722_v28 }
 0x4d6   :  { %v1079_v9 = vpop.f32.mrb[2].mxu1 }
 0x4d7   :  { %v1081_v12 = vpop.f32.mrb[3].mxu1  ;;  %v2924_v15 = vadd.f32 %v1079_v9, %v3836_v50 }
 0x4d8   :  { %v2925_v13 = vadd.f32 %v1081_v12, %v3832_v42 }
 0x4d9   :  { %v2431_v17 = vmul.f32 -1.442695, %v2924_v15 }
 0x4da   :  { %3022 = vtanh.f32 %v2925_v13  ;;  %v2432_v24 = vmul.f32 -1.442695, %v2925_v13 }
 0x4db   :  { %3024 = vpow2.f32 %v2431_v17 }
 0x4e4   :  { %v3023_v14 = vpop.eup %3022 }
 0x4e5   :  { %1101 = vrot.lane.b32.xlu1 %v3023_v14, %s3289_s1  ;;  %v3025_v19 = vpop.eup %3024 }
 0x4e6   :  { %v1092_v21 = vadd.f32 1.0, %v3025_v19 }
 0x4e8   :  { %3026 = vrcp.f32 %v1092_v21 }
 0x4f2   :  { %v3027_v4 = vpop.eup %3026 }
 0x4f3   :  { %v1099_v18 = vmul.f32 %v3027_v4, %v1003_v62 }
 0x557   :  { %v1102_v11 = vpop.permute.xlu1 %1101 }
 0x558   :  { %v1104_v16 = vmul.f32 %v3027_v4, %v1102_v11 }
 0x55a   :  { %1106 = vrot.lane.b32.xlu0 %v1104_v16, %s3289_s1 }
 0x5cc   :  { %v1107_v20 = vpop.permute.xlu0 %1106 }
 0x5cd   :  { %v1109_v22 = vadd.f32 %v1107_v20, %v1099_v18 }
 0x5cf   :  { %3028 = vtanh.f32 %v1109_v22 }
 0x5d0   :  { %3030 = vpow2.f32 %v2432_v24 }
 0x5d9   :  { %v3029_v23 = vpop.eup %3028 }
 0x5da   :  { %1112 = vrot.lane.b32.xlu1 %v3029_v23, %s3289_s1  ;;  %v3031_v26 = vpop.eup %3030 }
 0x5db   :  { %v1093_v27 = vadd.f32 1.0, %v3031_v26 }
 0x5dd   :  { %3032 = vrcp.f32 %v1093_v27 }
 0x5e7   :  { %v3033_v30 = vpop.eup %3032 }
 0x64c   :  { %v1113_v31 = vpop.permute.xlu1 %1112 }
 0x64d   :  { %v3859_v32 = vmul.f32 %v3033_v30, %v1113_v31 }
 0x64f   :  { %2433 = vmatmul.mubr.msk.f32.vlgmr.msra.gmra.mrb[4].mxu1 %vm903_vm3, %v3859_v32  ;;  %2657 = vmatprep.mubr.msk.f32.mxu0 %vm903_vm3, %v3859_v32 }
 0x650   :  { %2811 = vmatpush1.bf16.msra.mxu1 %v3742_v43  ;;  %1289 = vmatprep.mubr.f32.mxu1 %v3293_v25 }
 0x651   :  { %2813 = vmatprep.subr.bf16.mxu1 %v3745_v46 }
 0x654   :  { %2815 = vmatpush1.bf16.msra.mxu1 %v3763_v56 }
 0x655   :  { %2817 = vmatprep.subr.bf16.mxu1 %v3767_v59 }
 0x658   :  { %2819 = vmatpush1.bf16.msra.mxu1 %v3785_v7 }
 0x659   :  { %2821 = vmatprep.subr.bf16.mxu1 %v3789_v10 }
 0x65c   :  { %2823 = vmatpush1.bf16.msra.mxu1 %v3801_v2 }
 0x65d   :  { %2825 = vmatprep.subr.bf16.mxu1 %v3722_v28 }
 0x722   :  { %v1185_v33 = vpop.f32.mrb[4].mxu1 }
 0x723   :  { %v1187_v34 = vpop.f32.mrb[5].mxu1  ;;  %v2926_v37 = vadd.f32 %v1185_v33, %v3836_v50 }
 0x724   :  { %v2927_v35 = vadd.f32 %v1187_v34, %v3832_v42 }
 0x725   :  { %v2434_v38 = vmul.f32 -1.442695, %v2926_v37 }
 0x726   :  { %3034 = vtanh.f32 %v2927_v35  ;;  %v2435_v1 = vmul.f32 -1.442695, %v2927_v35 }
 0x727   :  { %3036 = vpow2.f32 %v2434_v38 }
 0x730   :  { %v3035_v36 = vpop.eup %3034 }
 0x731   :  { %1207 = vrot.lane.b32.xlu0 %v3035_v36, %s3289_s1  ;;  %v3037_v29 = vpop.eup %3036 }
 0x732   :  { %v1198_v39 = vadd.f32 1.0, %v3037_v29 }
 0x734   :  { %3038 = vrcp.f32 %v1198_v39 }
 0x73e   :  { %v3039_v40 = vpop.eup %3038 }
 0x73f   :  { %v1205_v61 = vmul.f32 %v3039_v40, %v1109_v22 }
 0x7a3   :  { %v1208_v41 = vpop.permute.xlu0 %1207 }
 0x7a4   :  { %v1210_v44 = vmul.f32 %v3039_v40, %v1208_v41 }
 0x7a6   :  { %1212 = vrot.lane.b32.xlu1 %v1210_v44, %s3289_s1 }
 0x818   :  { %v1213_v62 = vpop.permute.xlu1 %1212 }
 0x819   :  { %v1215_v63 = vadd.f32 %v1213_v62, %v1205_v61 }
 0x81b   :  { %3040 = vtanh.f32 %v1215_v63 }
 0x81c   :  { %3042 = vpow2.f32 %v2435_v1 }
 0x825   :  { %v3041_v0 = vpop.eup %3040 }
 0x826   :  { %1218 = vrot.lane.b32.xlu0 %v3041_v0, %s3289_s1  ;;  %v3043_v3 = vpop.eup %3042 }
 0x827   :  { %v1199_v5 = vadd.f32 1.0, %v3043_v3 }
 0x829   :  { %3044 = vrcp.f32 %v1199_v5 }
 0x833   :  { %v3045_v6 = vpop.eup %3044 }
 0x898   :  { %v1219_v9 = vpop.permute.xlu0 %1218 }
 0x899   :  { %v3903_v12 = vmul.f32 %v3045_v6, %v1219_v9 }
 0x89b   :  { %2436 = vmatmul.mubr.msk.f32.vlgmr.msra.gmra.mrb[6].mxu1 %vm903_vm3, %v3903_v12  ;;  %2658 = vmatmul.mubr.msk.f32.vlgmr.msra.gmra.mrb[14].mxu0 %vm903_vm3, %v3903_v12 }
 0x89c   :  { %2827 = vmatpush1.bf16.msra.mxu1 %v3742_v43  ;;  %1395 = vmatprep.mubr.f32.mxu1 %v3293_v25 }
 0x89d   :  { %2829 = vmatprep.subr.bf16.mxu1 %v3745_v46 }
 0x8a0   :  { %2831 = vmatpush1.bf16.msra.mxu1 %v3763_v56 }
 0x8a1   :  { %2833 = vmatprep.subr.bf16.mxu1 %v3767_v59 }
 0x8a4   :  { %2835 = vmatpush1.bf16.msra.mxu1 %v3785_v7 }
 0x8a5   :  { %2837 = vmatprep.subr.bf16.mxu1 %v3789_v10 }
 0x8a8   :  { %2839 = vmatpush1.bf16.msra.mxu1 %v3801_v2 }
 0x8a9   :  { %2841 = vmatprep.subr.bf16.mxu1 %v3722_v28 }
 0x96e   :  { %v1291_v13 = vpop.f32.mrb[6].mxu1 }
 0x96f   :  { %v1293_v14 = vpop.f32.mrb[7].mxu1  ;;  %v2928_v19 = vadd.f32 %v1291_v13, %v3836_v50 }
 0x970   :  { %v2929_v15 = vadd.f32 %v1293_v14, %v3832_v42 }
 0x971   :  { %v2437_v21 = vmul.f32 -1.442695, %v2928_v19 }
 0x972   :  { %3046 = vtanh.f32 %v2929_v15  ;;  %v2438_v27 = vmul.f32 -1.442695, %v2929_v15 }
 0x973   :  { %3048 = vpow2.f32 %v2437_v21 }
 0x97c   :  { %v3047_v17 = vpop.eup %3046 }
 0x97d   :  { %1313 = vrot.lane.b32.xlu1 %v3047_v17, %s3289_s1  ;;  %v3049_v4 = vpop.eup %3048 }
 0x97e   :  { %v1304_v11 = vadd.f32 1.0, %v3049_v4 }
 0x980   :  { %3050 = vrcp.f32 %v1304_v11 }
 0x98a   :  { %v3051_v16 = vpop.eup %3050 }
 0x98b   :  { %v1311_v22 = vmul.f32 %v3051_v16, %v1215_v63 }
 0x9ef   :  { %v1314_v18 = vpop.permute.xlu1 %1313 }
 0x9f0   :  { %v1316_v20 = vmul.f32 %v3051_v16, %v1314_v18 }
 0x9f2   :  { %1318 = vrot.lane.b32.xlu0 %v1316_v20, %s3289_s1 }
 0xa64   :  { %v1319_v23 = vpop.permute.xlu0 %1318 }
 0xa65   :  { %v1321_v24 = vadd.f32 %v1319_v23, %v1311_v22 }
 0xa67   :  { %3052 = vtanh.f32 %v1321_v24 }
 0xa68   :  { %3054 = vpow2.f32 %v2438_v27 }
 0xa71   :  { %v3053_v26 = vpop.eup %3052 }
 0xa72   :  { %1324 = vrot.lane.b32.xlu1 %v3053_v26, %s3289_s1  ;;  %v3055_v30 = vpop.eup %3054 }
 0xa73   :  { %v1305_v31 = vadd.f32 1.0, %v3055_v30  ;;  %v1647_v30 = vld [vmem:[%s4081_s8 + $0x8] sm:$0xff] }
 0xa75   :  { %3056 = vrcp.f32 %v1305_v31 }
 0xa7f   :  { %v3057_v33 = vpop.eup %3056 }
 0xae4   :  { %v1325_v34 = vpop.permute.xlu1 %1324 }
 0xae5   :  { %v3923_v35 = vmul.f32 %v3057_v33, %v1325_v34  ;;  %v1649_v33 = vld [vmem:[%s4081_s8 + $0x18] sm:$0xff] }
 0xae7   :  { %2439 = vmatmul.mubr.msk.f32.vlgmr.msra.gmra.mrb[8].mxu1 %vm903_vm3, %v3923_v35  ;;  %2660 = vmatprep.mubr.msk.f32.mxu0 %vm903_vm3, %v3923_v35 }
 0xae8   :  { %2843 = vmatpush1.bf16.msra.mxu1 %v3742_v43  ;;  %1501 = vmatprep.mubr.f32.mxu1 %v3293_v25 }
 0xae9   :  { %2845 = vmatprep.subr.bf16.mxu1 %v3745_v46 }
 0xaec   :  { %2847 = vmatpush1.bf16.msra.mxu1 %v3763_v56 }
 0xaed   :  { %2849 = vmatprep.subr.bf16.mxu1 %v3767_v59 }
 0xaf0   :  { %2851 = vmatpush1.bf16.msra.mxu1 %v3785_v7 }
 0xaf1   :  { %2853 = vmatprep.subr.bf16.mxu1 %v3789_v10 }
 0xaf4   :  { %2855 = vmatpush1.bf16.msra.mxu1 %v3801_v2 }
 0xaf5   :  { %2857 = vmatprep.subr.bf16.mxu1 %v3722_v28 }
 0xbba   :  { %v1397_v36 = vpop.f32.mrb[8].mxu1 }
 0xbbb   :  { %v1399_v37 = vpop.f32.mrb[9].mxu1  ;;  %v2930_v39 = vadd.f32 %v1397_v36, %v3836_v50  ;;  %v1650_v36 = vld [vmem:[%s4081_s8 + $0x20] sm:$0xff] }
 0xbbc   :  { %v2931_v38 = vadd.f32 %v1399_v37, %v3832_v42  ;;  %v1651_v37 = vld [vmem:[%s4081_s8 + $0x28] sm:$0xff] }
 0xbbd   :  { %v2440_v40 = vmul.f32 -1.442695, %v2930_v39 }
 0xbbe   :  { %3058 = vtanh.f32 %v2931_v38  ;;  %v2441_v53 = vmul.f32 -1.442695, %v2931_v38  ;;  %v2896_v38 = vpack.c.bf16 %v1651_v37, %v1650_v36 }
 0xbbf   :  { %3060 = vpow2.f32 %v2440_v40  ;;  %v1652_v40 = vld [vmem:[%s4081_s8 + $0x30] sm:$0xff] }
 0xbc8   :  { %v3059_v29 = vpop.eup %3058 }
 0xbc9   :  { %1419 = vrot.lane.b32.xlu0 %v3059_v29, %s3289_s1  ;;  %v3061_v41 = vpop.eup %3060 }
 0xbca   :  { %v1410_v44 = vadd.f32 1.0, %v3061_v41  ;;  %v1653_v41 = vld [vmem:[%s4081_s8 + $0x38] sm:$0xff] }
 0xbcc   :  { %3062 = vrcp.f32 %v1410_v44 }
 0xbd6   :  { %v3063_v45 = vpop.eup %3062 }
 0xbd7   :  { %v1417_v28 = vmul.f32 %v3063_v45, %v1321_v24 }
 0xc3b   :  { %v1420_v47 = vpop.permute.xlu0 %1419 }
 0xc3c   :  { %v1422_v48 = vmul.f32 %v3063_v45, %v1420_v47  ;;  %v2900_v45 = vpack.c.bf16 %v1653_v41, %v1652_v40 }
 0xc3e   :  { %1424 = vrot.lane.b32.xlu1 %v1422_v48, %s3289_s1  ;;  %v3294_v48 = vmov 0.0|0.0  }
 0xcb0   :  { %v1425_v49 = vpop.permute.xlu1 %1424 }
 0xcb1   :  { %v1427_v51 = vadd.f32 %v1425_v49, %v1417_v28 }
 0xcb3   :  { %3064 = vtanh.f32 %v1427_v51 }
 0xcb4   :  { %3066 = vpow2.f32 %v2441_v53 }
 0xcbd   :  { %v3065_v52 = vpop.eup %3064 }
 0xcbe   :  { %1430 = vrot.lane.b32.xlu0 %v3065_v52, %s3289_s1  ;;  %v3067_v54 = vpop.eup %3066 }
 0xcbf   :  { %v1411_v55 = vadd.f32 1.0, %v3067_v54 }
 0xcc1   :  { %3068 = vrcp.f32 %v1411_v55  ;;  %v1878_v55 = vld [vmem:[%s4083_s10] sm:$0xff] }
 0xccb   :  { %v3069_v57 = vpop.eup %3068 }
 0xd30   :  { %v1431_v58 = vpop.permute.xlu0 %1430 }
 0xd31   :  { %v3943_v60 = vmul.f32 %v3069_v57, %v1431_v58  ;;  %v1879_v57 = vld [vmem:[%s4083_s10 + $0x8] sm:$0xff] }
 0xd32   :  { %v2905_v58 = vpack.c.bf16 %v1879_v57, %v1878_v55 }
 0xd33   :  { %2442 = vmatmul.mubr.msk.f32.vlgmr.msra.gmra.mrb[10].mxu1 %vm903_vm3, %v3943_v60  ;;  %2661 = vmatmul.mubr.msk.f32.gmra.mrb[16].mxu0 %vm903_vm3, %v3943_v60 }
 0xd34   :  { %2859 = vmatpush1.bf16.msra.mxu1 %v3742_v43  ;;  %1607 = vmatprep.mubr.f32.mxu1 %v3293_v25 }
 0xd35   :  { %2861 = vmatprep.subr.bf16.mxu1 %v3745_v46 }
 0xd38   :  { %2863 = vmatpush1.bf16.msra.mxu1 %v3763_v56 }
 0xd39   :  { %2865 = vmatprep.subr.bf16.mxu1 %v3767_v59 }
 0xd3c   :  { %2867 = vmatpush1.bf16.msra.mxu1 %v3785_v7 }
 0xd3d   :  { %2869 = vmatprep.subr.bf16.mxu1 %v3789_v10 }
 0xd40   :  { %2871 = vmatpush1.bf16.msra.mxu1 %v3801_v2 }
 0xe06   :  { %v1503_v61 = vpop.f32.mrb[10].mxu1 }
 0xe07   :  { %v1505_v62 = vpop.f32.mrb[11].mxu1  ;;  %v2932_v46 = vadd.f32 %v1503_v61, %v3836_v50 }
 0xe08   :  { %v2933_v63 = vadd.f32 %v1505_v62, %v3832_v42 }
 0xe09   :  { %v2443_v0 = vmul.f32 -1.442695, %v2932_v46  ;;  %v1980_v46 = vld [vmem:[%s4084_s11 + $0x8] sm:$0xff] }
 0xe0a   :  { %3070 = vtanh.f32 %v2933_v63  ;;  %v2444_v9 = vmul.f32 -1.442695, %v2933_v63 }
 0xe0b   :  { %3072 = vpow2.f32 %v2443_v0 }
 0xe14   :  { %v3071_v43 = vpop.eup %3070 }
 0xe15   :  { %1525 = vrot.lane.b32.xlu1 %v3071_v43, %s3289_s1  ;;  %v3073_v56 = vpop.eup %3072  ;;  %v1979_v43 = vld [vmem:[%s4084_s11] sm:$0xff] }
 0xe16   :  { %v1516_v59 = vadd.f32 1.0, %v3073_v56 }
 0xe18   :  { %3074 = vrcp.f32 %v1516_v59 }
 0xe22   :  { %v3075_v7 = vpop.eup %3074 }
 0xe23   :  { %v1523_v2 = vmul.f32 %v3075_v7, %v1427_v51 }
 0xe87   :  { %v1526_v1 = vpop.permute.xlu1 %1525 }
 0xe88   :  { %v1528_v10 = vmul.f32 %v3075_v7, %v1526_v1 }
 0xe8a   :  { %1530 = vrot.lane.b32.xlu0 %v1528_v10, %s3289_s1  ;;  %v2911_v10 = vpack.c.bf16 %v1980_v46, %v1979_v43 }
 0xefc   :  { %v1531_v3 = vpop.permute.xlu0 %1530 }
 0xefd   :  { %v1533_v5 = vadd.f32 %v1531_v3, %v1523_v2 }
 0xeff   :  { %3076 = vtanh.f32 %v1533_v5 }
 0xf00   :  { %3078 = vpow2.f32 %v2444_v9 }
 0xf09   :  { %v3077_v6 = vpop.eup %3076 }
 0xf0a   :  { %1536 = vrot.lane.b32.xlu1 %v3077_v6, %s3289_s1  ;;  %v3079_v13 = vpop.eup %3078 }
 0xf0b   :  { %v1517_v14 = vadd.f32 1.0, %v3079_v13 }
 0xf0d   :  { %3080 = vrcp.f32 %v1517_v14 }
 0xf17   :  { %v3081_v15 = vpop.eup %3080 }
 0xf7c   :  { %v1537_v17 = vpop.permute.xlu1 %1536 }
 0xf7d   :  { %v3962_v19 = vmul.f32 %v3081_v15, %v1537_v17 }
 0xf7f   :  { %2445 = vmatmul.mubr.msk.f32.vlgmr.msra.gmra.mrb[12].mxu1 %vm903_vm3, %v3962_v19  ;;  %2663 = vmatprep.mubr.msk.f32.mxu0 %vm903_vm3, %v3962_v19 }
0x1052   :  { %v1609_v21 = vpop.f32.mrb[12].mxu1 }
0x1053   :  { %v1611_v4 = vpop.f32.mrb[13].mxu1  ;;  %v2934_v18 = vadd.f32 %v1609_v21, %v3836_v50  ;;  %v1648_v50 = vld [vmem:[%s4081_s8 + $0x10] sm:$0xff] }
0x1054   :  { %v2935_v11 = vadd.f32 %v1611_v4, %v3832_v42  ;;  %v1646_v42 = vld [vmem:[%s4081_s8] sm:$0xff]  ;;  %v2892_v34 = vpack.c.bf16 %v1649_v33, %v1648_v50 }
0x1055   :  { %v2446_v20 = vmul.f32 -1.442695, %v2934_v18  ;;  %v2888_v31 = vpack.c.bf16 %v1647_v30, %v1646_v42 }
0x1056   :  { %3082 = vtanh.f32 %v2935_v11  ;;  %v2447_v28 = vmul.f32 -1.442695, %v2935_v11  ;;  %v2469_v11 = vld [vmem:[%s4085_s12] ss:$0 sm:$0xff]  ;;  %s3298_s12 = smov 96  }
0x1057   :  { %3084 = vpow2.f32 %v2446_v20  ;;  %2889 = vmatprep.subr.bf16.mxu0 %v2888_v31 }
0x1058   :  { %2891 = vmatpush3.bf16.msra.mxu0 %v2888_v31 }
0x1059   :  { %2893 = vmatprep.subr.bf16.mxu0 %v2892_v34 }
0x105c   :  { %2895 = vmatpush3.bf16.msra.mxu0 %v2892_v34 }
0x105d   :  { %2897 = vmatprep.subr.bf16.mxu0 %v2896_v38 }
0x1060   :  { %v3083_v16 = vpop.eup %3082  ;;  %2899 = vmatpush3.bf16.msra.mxu0 %v2896_v38 }
0x1061   :  { %1631 = vrot.lane.b32.xlu0 %v3083_v16, %s3289_s1  ;;  %v3085_v22 = vpop.eup %3084  ;;  %2901 = vmatprep.subr.bf16.mxu0 %v2900_v45 }
0x1062   :  { %v1622_v23 = vadd.f32 1.0, %v3085_v22 }
0x1064   :  { %3086 = vrcp.f32 %v1622_v23  ;;  %2903 = vmatpush3.bf16.msra.mxu0 %v2900_v45 }
0x1065   :  { %2904 = vmatprep.subr.bf16.mxu0 %v3294_v48 }
0x106e   :  { %v3087_v24 = vpop.eup %3086 }
0x106f   :  { %v1629_v29 = vmul.f32 %v3087_v24, %v1533_v5 }
0x10d3   :  { %v1632_v26 = vpop.permute.xlu0 %1631 }
0x10d4   :  { %v1634_v27 = vmul.f32 %v3087_v24, %v1632_v26 }
0x10d6   :  { %1636 = vrot.lane.b32.xlu1 %v1634_v27, %s3289_s1 }
0x1148   :  { %v1637_v39 = vpop.permute.xlu1 %1636 }
0x1149   :  { %v1639_v44 = vadd.f32 %v1637_v39, %v1629_v29 }
0x114b   :  { %3088 = vtanh.f32 %v1639_v44 }
0x114c   :  { %3090 = vpow2.f32 %v2447_v28 }
0x1155   :  { %v3089_v47 = vpop.eup %3088 }
0x1156   :  { %1642 = vrot.lane.b32.xlu0 %v3089_v47, %s3289_s1  ;;  %v3091_v49 = vpop.eup %3090 }
0x1157   :  { %v1623_v51 = vadd.f32 1.0, %v3091_v49 }
0x1159   :  { %3092 = vrcp.f32 %v1623_v51 }
0x1163   :  { %v3093_v52 = vpop.eup %3092 }
0x11c8   :  { %v1643_v53 = vpop.permute.xlu0 %1642 }
0x11c9   :  { %v1645_v54 = vmul.f32 %v3093_v52, %v1643_v53 }
0x11cb   :  { %2664 = vmatmul.mubr.msk.f32.gmra.mrb[18].mxu0 %vm903_vm3, %v1645_v54 }
0x11cc   :  { %2682 = vmatprep.mubr.msk.f32.mxu0 %vm903_vm3, %v3841_v8  ;;  %v1880_v8 = vld [vmem:[%s4083_s10 + $0x10] sm:$0xff] }
0x11cf   :  { %2683 = vmatmul.mubr.msk.f32.vlgmr.msra.gmra.mrb[14].mxu0 %vm903_vm3, %v3859_v32  ;;  %v1881_v32 = vld [vmem:[%s4083_s10 + $0x18] sm:$0xff] }
0x11d0   :  { %2685 = vmatprep.mubr.msk.f32.mxu0 %vm903_vm3, %v3903_v12  ;;  %2906 = vmatpush3.bf16.msra.mxu0 %v2905_v58  ;;  %v2908_v12 = vpack.c.bf16 %v1881_v32, %v1880_v8 }
0x11d1   :  { %2907 = vmatprep.subr.bf16.mxu0 %v3294_v48 }
0x11d3   :  { %2686 = vmatmul.mubr.msk.f32.gmra.mrb[16].mxu0 %vm903_vm3, %v3923_v35  ;;  %v2468_v35 = vld [vmem:[#allocation9] ss:$0 sm:$0xff] }
0x11d4   :  { %2688 = vmatprep.mubr.msk.f32.mxu0 %vm903_vm3, %v3943_v60  ;;  %2909 = vmatpush3.bf16.msra.mxu0 %v2908_v12 }
0x11d5   :  { %2910 = vmatprep.subr.bf16.mxu0 %v3294_v48 }
0x11d7   :  { %2689 = vmatmul.mubr.msk.f32.gmra.mrb[18].mxu0 %vm903_vm3, %v3962_v19 }
0x11d8   :  { %2699 = vmatprep.mubr.msk.f32.mxu0 %vm3295_vm4, %v3293_v25 }
0x12a2   :  { %v2684_v60 = vpop.f32.mrb[14].mxu0 }
0x12a3   :  { %v1864_v61 = vadd.f32 %v2684_v60, %v2468_v35  ;;  %v1827_v62 = vpop.f32.mrb[15].mxu0 }
0x12a4   :  { %v1863_v63 = vadd.f32 %v2468_v35, %v1827_v62 }
0x12a5   :  { %v1870_v0 = vmax.f32 %v1864_v61, 0.0 }
0x12a6   :  { %v1869_v56 = vmax.f32 %v1863_v63, 0.0  ;;  %v2687_v59 = vpop.f32.mrb[16].mxu0 }
0x12a7   :  { %v1866_v7 = vadd.f32 %v2687_v59, %v2468_v35  ;;  %v1837_v1 = vpop.f32.mrb[17].mxu0  ;;  %v2279_v59 = vld [vmem:[#allocation10] sm:$0xff] }
0x12a8   :  { %v1875_v2 = vmax.f32 %v1869_v56, %v1870_v0  ;;  %v1865_v3 = vadd.f32 %v2468_v35, %v1837_v1 }
0x12a9   :  { %v1872_v5 = vmax.f32 %v1866_v7, 0.0  ;;  %v2280_v7 = vld [vmem:[#allocation10 + $0x8] sm:$0xff] }
0x12aa   :  { %v1871_v6 = vmax.f32 %v1865_v3, 0.0  ;;  %v2690_v9 = vpop.f32.mrb[18].mxu0  ;;  %2700 = vmatmul.mubr.msk.f32.vlgmr.msra.gmra.mrb[20].mxu0 %vm1889_vm5, %v1875_v2  ;;  %v2920_v1 = vpack.c.bf16 %v2280_v7, %v2279_v59 }
0x12ab   :  { %v1868_v13 = vadd.f32 %v2690_v9, %v2468_v35  ;;  %2912 = vmatpush3.bf16.msra.mxu0 %v2911_v10  ;;  %v1847_v14 = vpop.f32.mrb[19].mxu0  ;;  %2702 = vmatprep.mubr.msk.f32.mxu0 %vm3295_vm4, %v3293_v25 }
0x12ac   :  { %v1876_v15 = vmax.f32 %v1871_v6, %v1872_v5  ;;  %v1867_v17 = vadd.f32 %v2468_v35, %v1847_v14  ;;  %2913 = vmatprep.subr.bf16.mxu0 %v3294_v48  ;;  %v2478_v6 = vld [vmem:[#allocation12] ss:$0 sm:$0xff] }
0x12ad   :  { %v1874_v19 = vmax.f32 %v1868_v13, 0.0 }
0x12ae   :  { %v1873_v21 = vmax.f32 %v1867_v17, 0.0  ;;  %2703 = vmatmul.mubr.msk.f32.gmra.mrb[22].mxu0 %vm1889_vm5, %v1876_v15 }
0x12af   :  { %2705 = vmatprep.mubr.msk.f32.mxu0 %vm3295_vm4, %v3293_v25 }
0x12b0   :  { %v1877_v4 = vmax.f32 %v1873_v21, %v1874_v19 }
0x12b2   :  { %2706 = vmatmul.mubr.msk.f32.gmra.mrb[24].mxu0 %vm1889_vm5, %v1877_v4 }
0x12b3   :  { %2712 = vmatprep.mubr.msk.f32.mxu0 %vm3295_vm4, %v3293_v25 }
0x12b6   :  { %2713 = vmatmul.mubr.f32.vlgmr.msra.gmra.mrb[20].mxu0 %v3293_v25 }
0x12b7   :  { %2915 = vmatpush3.bf16.msra.mxu0 %v2911_v10  ;;  %2719 = vmatprep.mubr.msk.f32.mxu0 %vm3295_vm4, %v3293_v25 }
0x12b8   :  { %2916 = vmatprep.subr.bf16.mxu0 %v3294_v48 }
0x1389   :  { %v2050_v16 = vpop.f32.mrb[20].mxu0 }
0x138a   :  { %v2936_v18 = vadd.f32 %v2469_v11, %v2050_v16  ;;  %v2714_v20 = vpop.f32.mrb[21].mxu0 }
0x138c   :  { %3094 = vtanh.f32 %v2936_v18  ;;  %v2473_v23 = vmul.f32 -1.442695, %v2936_v18 }
0x138e   :  { %3096 = vpow2.f32 %v2473_v23 }
0x1396   :  { %v3095_v22 = vpop.eup %3094 }
0x1397   :  { %2064 = vrot.lane.b32.xlu1 %v3095_v22, %s3296_s9 }
0x1398   :  { %v3097_v24 = vpop.eup %3096 }
0x1399   :  { %v2058_v26 = vadd.f32 1.0, %v3097_v24 }
0x139b   :  { %3098 = vrcp.f32 %v2058_v26 }
0x13a5   :  { %v3099_v27 = vpop.eup %3098 }
0x13a6   :  { %v2062_v50 = vmul.f32 0.0, %v3099_v27 }
0x1409   :  { %v2065_v42 = vpop.permute.xlu1 %2064 }
0x140a   :  { %v2067_v30 = vmul.f32 %v3099_v27, %v2065_v42 }
0x140c   :  { %2069 = vrot.lane.b32.xlu0 %v2067_v30, %s3297_s5 }
0x147e   :  { %v2070_v31 = vpop.permute.xlu0 %2069 }
0x147f   :  { %v2072_v33 = vadd.f32 %v2070_v31, %v2062_v50 }
0x1481   :  { %3100 = vtanh.f32 %v2072_v33 }
0x148b   :  { %v3101_v34 = vpop.eup %3100 }
0x148c   :  { %2075 = vrot.lane.b32.xlu1 %v3101_v34, %s3297_s5 }
0x14fe   :  { %v2076_v36 = vpop.permute.xlu1 %2075 }
0x14ff   :  { %v2078_v37 = vmul.f32 %v3099_v27, %v2076_v36 }
0x1501   :  { %2080 = vrot.lane.b32.xlu0 %v2078_v37, %s3298_s12 }
0x1573   :  { %v2081_v38 = vpop.permute.xlu0 %2080 }
0x1574   :  { %2720 = vmatmul.mubr.msk.f32.vlgmr.msra.gmra.mrb[22].mxu0 %vm1981_vm6, %v2081_v38 }
0x1575   :  { %2918 = vmatpush3.bf16.msra.mxu0 %v2911_v10  ;;  %2726 = vmatprep.mubr.msk.f32.mxu0 %vm3295_vm4, %v3293_v25 }
0x1576   :  { %2919 = vmatprep.subr.bf16.mxu0 %v3294_v48 }
0x1647   :  { %v2150_v29 = vpop.f32.mrb[22].mxu0 }
0x1648   :  { %v2937_v39 = vadd.f32 %v2469_v11, %v2150_v29  ;;  %v2721_v40 = vpop.f32.mrb[23].mxu0 }
0x164a   :  { %3102 = vtanh.f32 %v2937_v39  ;;  %v2475_v44 = vmul.f32 -1.442695, %v2937_v39 }
0x164c   :  { %3104 = vpow2.f32 %v2475_v44 }
0x1654   :  { %v3103_v41 = vpop.eup %3102 }
0x1655   :  { %2164 = vrot.lane.b32.xlu1 %v3103_v41, %s3296_s9 }
0x1656   :  { %v3105_v45 = vpop.eup %3104 }
0x1657   :  { %v2158_v47 = vadd.f32 1.0, %v3105_v45 }
0x1659   :  { %3106 = vrcp.f32 %v2158_v47 }
0x1663   :  { %v3107_v28 = vpop.eup %3106 }
0x1664   :  { %v2162_v52 = vmul.f32 %v3107_v28, %v2072_v33 }
0x16c7   :  { %v2165_v49 = vpop.permute.xlu1 %2164 }
0x16c8   :  { %v2167_v51 = vmul.f32 %v3107_v28, %v2165_v49 }
0x16ca   :  { %2169 = vrot.lane.b32.xlu0 %v2167_v51, %s3297_s5 }
0x173c   :  { %v2170_v53 = vpop.permute.xlu0 %2169 }
0x173d   :  { %v2172_v48 = vadd.f32 %v2170_v53, %v2162_v52 }
0x173f   :  { %3108 = vtanh.f32 %v2172_v48 }
0x1749   :  { %v3109_v54 = vpop.eup %3108 }
0x174a   :  { %2175 = vrot.lane.b32.xlu1 %v3109_v54, %s3297_s5 }
0x17bc   :  { %v2176_v55 = vpop.permute.xlu1 %2175 }
0x17bd   :  { %v2178_v57 = vmul.f32 %v3107_v28, %v2176_v55 }
0x17bf   :  { %2180 = vrot.lane.b32.xlu0 %v2178_v57, %s3298_s12 }
0x1831   :  { %v2181_v58 = vpop.permute.xlu0 %2180 }
0x1832   :  { %2727 = vmatmul.mubr.msk.f32.vlgmr.msra.gmra.mrb[24].mxu0 %vm1981_vm6, %v2181_v58 }
0x1833   :  { %2733 = vmatprep.mubr.msk.f32.mxu0 %vm3295_vm4, %v3293_v25  ;;  %2921 = vmatpush3.bf16.msra.mxu0 %v2920_v1 }
0x1905   :  { %v2250_v8 = vpop.f32.mrb[24].mxu0 }
0x1906   :  { %v2938_v32 = vadd.f32 %v2469_v11, %v2250_v8  ;;  %v2728_v12 = vpop.f32.mrb[25].mxu0 }
0x1908   :  { %3110 = vtanh.f32 %v2938_v32  ;;  %v2477_v60 = vmul.f32 -1.442695, %v2938_v32 }
0x190a   :  { %3112 = vpow2.f32 %v2477_v60 }
0x1912   :  { %v3111_v35 = vpop.eup %3110 }
0x1913   :  { %2264 = vrot.lane.b32.xlu1 %v3111_v35, %s3296_s9 }
0x1914   :  { %v3113_v61 = vpop.eup %3112 }
0x1915   :  { %v2258_v62 = vadd.f32 1.0, %v3113_v61 }
0x1917   :  { %3114 = vrcp.f32 %v2258_v62 }
0x1921   :  { %v3115_v63 = vpop.eup %3114 }
0x1922   :  { %v2262_v0 = vmul.f32 %v3115_v63, %v2172_v48 }
0x1985   :  { %v2265_v43 = vpop.permute.xlu1 %2264 }
0x1986   :  { %v2267_v46 = vmul.f32 %v3115_v63, %v2265_v43 }
0x1988   :  { %2269 = vrot.lane.b32.xlu0 %v2267_v46, %s3297_s5 }
0x19fa   :  { %v2270_v56 = vpop.permute.xlu0 %2269 }
0x19fb   :  { %v2272_v25 = vadd.f32 %v2270_v56, %v2262_v0 }
0x19fd   :  { %3116 = vtanh.f32 %v2272_v25 }
0x1a07   :  { %v3117_v10 = vpop.eup %3116 }
0x1a08   :  { %2275 = vrot.lane.b32.xlu1 %v3117_v10, %s3297_s5 }
0x1a7a   :  { %v2276_v2 = vpop.permute.xlu1 %2275 }
0x1a7b   :  { %v2278_v3 = vmul.f32 %v3115_v63, %v2276_v2 }
0x1a7d   :  { %2289 = vrot.lane.b32.xlu0 %v2278_v3, %s3298_s12 }
0x1aef   :  { %v2290_v5 = vpop.permute.xlu0 %2289 }
0x1af0   :  { %2734 = vmatmul.mubr.msk.f32.vlgmr.msra.gmra.mrb[26].mxu0 %vm1981_vm6, %v2290_v5 }
0x1bc3   :  { %v2359_v9 = vpop.f32.mrb[26].mxu0 }
0x1bc4   :  { %v2360_v13 = vadd.f32 %v2478_v6, %v2359_v9  ;;  %v2735_v14 = vpop.f32.mrb[27].mxu0 }
0x1bc6   :  { %3118 = vtanh.f32 %v2360_v13 }
0x1bd0   :  { %v3119_v15 = vpop.eup %3118 }
0x1bd1   :  { %2364 = vst [vmem:[%s4088_s15] sm:$0xff] %v3119_v15 }
0x1bd2   :  { %2369 = vsyncpa [#allocation3], 1 }
0x1bd3   :  { %2370 = vsyncpa [#allocation5], 1 }
0x1bd4   :  { %2371 = vsyncpa [#allocation8], 1 }
0x1bd5   :  { %2372 = vsyncpa [#allocation11], 1 }

</bundles_post_ra>
